<compile_context>
chip_gen: v7x
topology: tpu7x:2x2x1
jax: 0.10.0
libtpu: 0.0.40
codegen_flags: <defaults>
</compile_context>

<pallas_src>
import functools

import jax
import jax.numpy as jnp
from jax.experimental import pallas as pl
from jax.experimental.pallas import tpu as pltpu


_LANE = 128
_VMEM_LIMIT_BYTES = 48 * 1024 * 1024   # explicit scoped-VMEM budget (fits v7x 64 MiB physical)


# ----------------------------------------------------------------------------
# Small helpers
# ----------------------------------------------------------------------------
def _round_up(x, m):
    return ((x + m - 1) // m) * m


def _fold_bn(gamma, beta, mean, var, eps):
    scale = gamma.astype(jnp.float32) / jnp.sqrt(var.astype(jnp.float32) + eps)
    bias = beta.astype(jnp.float32) - mean.astype(jnp.float32) * scale
    return scale, bias


def _pick_row_tile(rows, k):
    """Bigger row tiles for small-K layers; keep a few grid steps for megacore balance."""
    base = 1024 if k <= 1152 else (512 if k <= 2560 else 256)
    tr = min(base, _round_up(rows, 8))
    while tr >= 128 and -(-rows // tr) < 4:
        tr //= 2
    return _round_up(max(tr, 8), 8)


# ----------------------------------------------------------------------------
# Fused 3x3 conv kernels (stride 1): in-kernel patch extraction, no HBM im2col.
#   xp_ref : (1, Ho+2, Wo+2, Cin)  bf16   spatially padded image
#   w_ref  : (9, Cin, CoT)         bf16   3x3 taps, BN scale already folded in
#   b_ref  : (1, CoT)              f32    folded BN bias (+ shortcut BN bias)
#   o_ref  : (1, Ho*Wo, CoT)              lane-dense output tile
# ----------------------------------------------------------------------------
def _conv_taps_accumulate(xp_ref, w_ref, Ho, Wo, acc):
    cin = xp_ref.shape[-1]
    # Work on an f32 copy of the padded image so the per-tap slice+reshape stays in the
    # layout-friendly 8-sublane regime; operands are cast back to bf16 right before the
    # MXU dot, so matmul throughput and HBM traffic stay bf16.
    xp = xp_ref[0].astype(jnp.float32)                       # (Hp, Wp, Cin)
    for t in range(9):
        dh, dw = divmod(t, 3)
        patch = xp[dh:dh + Ho, dw:dw + Wo, :].reshape(Ho * Wo, cin)
        acc = acc + jnp.dot(patch.astype(jnp.bfloat16), w_ref[t],
                            preferred_element_type=jnp.float32)
    return acc


def _conv3x3_bn_act_kernel(xp_ref, w_ref, b_ref, o_ref, *, Ho, Wo, relu):
    cot = o_ref.shape[-1]
    acc = jnp.zeros((Ho * Wo, cot), jnp.float32)
    acc = _conv_taps_accumulate(xp_ref, w_ref, Ho, Wo, acc)
    y = acc + b_ref[...]
    if relu:
        y = jnp.maximum(y, 0.0)
    o_ref[0] = y.astype(o_ref.dtype)


def _conv3x3_bn_res_relu_kernel(xp_ref, w_ref, b_ref, r_ref, wr_ref, o_ref, *, Ho, Wo):
    # conv2 + BN2 + shortcut (identity-as-eye or 1x1-conv+BN projection, as a small GEMM)
    # + ReLU, all fused in one kernel.
    acc = jnp.dot(r_ref[0], wr_ref[...], preferred_element_type=jnp.float32)
    acc = _conv_taps_accumulate(xp_ref, w_ref, Ho, Wo, acc)
    y = jnp.maximum(acc + b_ref[...], 0.0)
    o_ref[0] = y.astype(o_ref.dtype)


def _conv3x3_fused(xp, w9, bias, *, Ho, Wo, relu, residual=None, out_dtype=jnp.bfloat16):
    """Fused stride-1 3x3 conv.  Grid: (batch, Cout tiles).  Returns (N, Ho*Wo, Cpad)."""
    N, Hp, Wp, Cin = xp.shape
    Cpad = w9.shape[-1]
    cot = 256 if Cpad % 256 == 0 else min(Cpad, _LANE)
    nco = Cpad // cot

    in_specs = [
        pl.BlockSpec((1, Hp, Wp, Cin), lambda n, c: (n, 0, 0, 0)),   # revisited across c -> DMA once per image
        pl.BlockSpec((9, Cin, cot), lambda n, c: (0, 0, c)),
        pl.BlockSpec((1, cot), lambda n, c: (0, c)),
    ]
    args = [xp, w9, bias]
    if residual is None:
        kernel = functools.partial(_conv3x3_bn_act_kernel, Ho=Ho, Wo=Wo, relu=relu)
    else:
        res_flat, wres = residual
        Cr = res_flat.shape[-1]
        in_specs += [
            pl.BlockSpec((1, Ho * Wo, Cr), lambda n, c: (n, 0, 0)),
            pl.BlockSpec((Cr, cot), lambda n, c: (0, c)),
        ]
        args += [res_flat, wres]
        kernel = functools.partial(_conv3x3_bn_res_relu_kernel, Ho=Ho, Wo=Wo)

    return pl.pallas_call(
        kernel,
        out_shape=jax.ShapeDtypeStruct((N, Ho * Wo, Cpad), out_dtype),
        grid=(N, nco),
        in_specs=in_specs,
        out_specs=pl.BlockSpec((1, Ho * Wo, cot), lambda n, c: (n, 0, c)),
        compiler_params=pltpu.CompilerParams(
            dimension_semantics=("parallel", "parallel"),
            vmem_limit_bytes=_VMEM_LIMIT_BYTES,
        ),
    )(*args)


# ----------------------------------------------------------------------------
# GEMM fallback kernel (used for the strided conv1, and as a safety net):
# row-tiled ("parallel") x K-tiled ("arbitrary") matmul with f32 VMEM accumulator,
# fused bias + optional ReLU epilogue, lane-dense (padded) output channels.
# ----------------------------------------------------------------------------
def _gemm_bn_act_kernel(x_ref, w_ref, b_ref, o_ref, acc_ref, *, relu):
    k = pl.program_id(1)

    @pl.when(k == 0)
    def _init():
        acc_ref[...] = jnp.zeros_like(acc_ref)

    acc_ref[...] += jnp.dot(x_ref[...], w_ref[...], preferred_element_type=jnp.float32)

    @pl.when(k == pl.num_programs(1) - 1)
    def _finalize():
        y = acc_ref[...] + b_ref[...]
        if relu:
            y = jnp.maximum(y, 0.0)
        o_ref[...] = y.astype(o_ref.dtype)


def _fused_gemm(cols, w, bias, *, relu, out_dtype):
    """(rows, K) bf16 @ (K, Cpad) bf16 + bias [+ relu], f32 accumulation."""
    rows, K = cols.shape
    Cpad = w.shape[-1]

    # K tiling only when the full-K operand blocks would strain VMEM.
    if K > 1536:
        tk = 512
        Kp = _round_up(K, tk)
        if Kp != K:
            cols = jnp.pad(cols, ((0, 0), (0, Kp - K)))
            w = jnp.pad(w, ((0, Kp - K), (0, 0)))
    else:
        tk, Kp = K, K
    nk = Kp // tk

    tr = _pick_row_tile(rows, Kp)
    rows_pad = _round_up(rows, tr)
    if rows_pad != rows:
        cols = jnp.pad(cols, ((0, rows_pad - rows), (0, 0)))

    out = pl.pallas_call(
        functools.partial(_gemm_bn_act_kernel, relu=relu),
        out_shape=jax.ShapeDtypeStruct((rows_pad, Cpad), out_dtype),
        grid=(rows_pad // tr, nk),
        in_specs=[
            pl.BlockSpec((tr, tk), lambda i, k: (i, k)),
            pl.BlockSpec((tk, Cpad), lambda i, k: (k, 0)),
            pl.BlockSpec((1, Cpad), lambda i, k: (0, 0)),      # grid-resident
        ],
        out_specs=pl.BlockSpec((tr, Cpad), lambda i, k: (i, 0)),
        scratch_shapes=[pltpu.VMEM((tr, Cpad), jnp.float32)],
        compiler_params=pltpu.CompilerParams(
            dimension_semantics=("parallel", "arbitrary"),
            vmem_limit_bytes=_VMEM_LIMIT_BYTES,
        ),
    )(cols, w, bias)
    return out[:rows]


def _im2col_3x3(x_nhwc, stride):
    """3x3 / pad=1 patch matrix (used only for strided conv1 / fallback paths)."""
    N, H, W, C = x_nhwc.shape
    xp = jnp.pad(x_nhwc, ((0, 0), (1, 1), (1, 1), (0, 0)))
    Ho = (H - 1) // stride + 1
    Wo = (W - 1) // stride + 1
    cols = []
    for dh in range(3):
        for dw in range(3):
            patch = jax.lax.slice(
                xp,
                (0, dh, dw, 0),
                (N, dh + (Ho - 1) * stride + 1, dw + (Wo - 1) * stride + 1, C),
                (1, stride, stride, 1),
            )
            cols.append(patch)
    cols = jnp.concatenate(cols, axis=-1)                       # (N, Ho, Wo, 9*C)
    return cols.reshape(N * Ho * Wo, 9 * C), (Ho, Wo)


# ----------------------------------------------------------------------------
# conv1 / conv2 drivers
# ----------------------------------------------------------------------------
def _conv1_forward(x, w9, bias, stride, Ho, Wo):
    """relu(bn1(conv1(x))) -> (N, Ho*Wo, Cpad) bf16."""
    N = x.shape[0]
    Cpad = w9.shape[-1]
    if stride == 1:
        xp = jnp.pad(x, ((0, 0), (1, 1), (1, 1), (0, 0)))
        try:
            return _conv3x3_fused(xp, w9, bias, Ho=Ho, Wo=Wo, relu=True)
        except Exception:
            # Conservative fallback if the fused patch-extraction path fails to lower
            # on some backend: materialized im2col + tiled GEMM (still bf16 / fused BN).
            pass
    cols, _ = _im2col_3x3(x, stride)
    out = _fused_gemm(cols, w9.reshape(-1, Cpad), bias, relu=True, out_dtype=jnp.bfloat16)
    return out.reshape(N, Ho * Wo, Cpad)


def _conv2_forward(out1_img, w9, bias, res_flat, wres, Ho, Wo):
    """relu(bn2(conv2(out1)) + shortcut) -> (N, Ho*Wo, Cpad) f32."""
    N = out1_img.shape[0]
    Cpad = w9.shape[-1]
    out1p = jnp.pad(out1_img, ((0, 0), (1, 1), (1, 1), (0, 0)))
    try:
        return _conv3x3_fused(out1p, w9, bias, Ho=Ho, Wo=Wo, relu=True,
                              residual=(res_flat, wres), out_dtype=jnp.float32)
    except Exception:
        # Fallback: one GEMM over the concatenated [im2col(out1) | shortcut-pixels] with
        # stacked [w2 ; wres] weights, so conv2 + shortcut + relu still fuse into one call.
        cols, _ = _im2col_3x3(out1_img, 1)
        cols = jnp.concatenate([cols, res_flat.reshape(N * Ho * Wo, -1)], axis=-1)
        w_all = jnp.concatenate([w9.reshape(-1, Cpad), wres], axis=0)
        out = _fused_gemm(cols, w_all, bias, relu=True, out_dtype=jnp.float32)
        return out.reshape(N, Ho * Wo, Cpad)


# ----------------------------------------------------------------------------
# BasicBlockResNet34 forward (eval-mode BN folded)
# ----------------------------------------------------------------------------
def basic_block_resnet34(x_nchw, params, *, stride=1, eps=1e-5):
    N, Cin, H, W = x_nchw.shape
    planes = params["conv1_w"].shape[0]
    Ho = (H - 1) // stride + 1
    Wo = (W - 1) // stride + 1
    Cpad = _round_up(planes, _LANE)
    pad_c = Cpad - planes

    # NHWC, bf16 activations for the MXU (accumulation stays f32 inside the kernels).
    x = jnp.transpose(x_nchw, (0, 2, 3, 1)).astype(jnp.bfloat16)

    s1, b1 = _fold_bn(params["bn1_gamma"], params["bn1_beta"],
                      params["bn1_mean"], params["bn1_var"], eps)
    s2, b2 = _fold_bn(params["bn2_gamma"], params["bn2_beta"],
                      params["bn2_mean"], params["bn2_var"], eps)

    # conv1 weights: OIHW -> (tap, Cin, Cout), BN1 scale folded in, Cout lane-padded.
    w1 = jnp.transpose(params["conv1_w"], (2, 3, 1, 0)).reshape(9, Cin, planes) * s1[None, None, :]
    w1 = jnp.pad(w1, ((0, 0), (0, 0), (0, pad_c))).astype(jnp.bfloat16)
    b1p = jnp.pad(b1, (0, pad_c)).reshape(1, Cpad).astype(jnp.float32)

    out1 = _conv1_forward(x, w1, b1p, stride, Ho, Wo)              # (N, Ho*Wo, Cpad) bf16
    out1_img = out1.reshape(N, Ho, Wo, Cpad)[..., :planes]         # drop lane padding

    # conv2 weights (BN2 scale folded) + shortcut expressed as a 1x1 GEMM fused into conv2.
    w2 = jnp.transpose(params["conv2_w"], (2, 3, 1, 0)).reshape(9, planes, planes) * s2[None, None, :]
    w2 = jnp.pad(w2, ((0, 0), (0, 0), (0, pad_c))).astype(jnp.bfloat16)

    if stride != 1 or Cin != planes:
        ssc, bsc = _fold_bn(params["sc_bn_gamma"], params["sc_bn_beta"],
                            params["sc_bn_mean"], params["sc_bn_var"], eps)
        wres = jnp.transpose(params["sc_w"].reshape(planes, Cin)) * ssc[None, :]   # (Cin, planes)
        bias2 = b2 + bsc
        res = x[:, ::stride, ::stride, :]
    else:
        wres = jnp.eye(Cin, dtype=jnp.float32)                     # identity shortcut as a GEMM
        bias2 = b2
        res = x
    wres = jnp.pad(wres, ((0, 0), (0, pad_c))).astype(jnp.bfloat16)
    b2p = jnp.pad(bias2, (0, pad_c)).reshape(1, Cpad).astype(jnp.float32)
    res_flat = res.reshape(N, Ho * Wo, Cin)

    out2 = _conv2_forward(out1_img, w2, b2p, res_flat, wres, Ho, Wo)   # (N, Ho*Wo, Cpad) f32
    out = out2.reshape(N, Ho, Wo, Cpad)[..., :planes]
    return jnp.transpose(out, (0, 3, 1, 2)).astype(x_nchw.dtype)       # NCHW


# ----------------------------------------------------------------------------
# Pure-JAX f32 reference (correctness check only)
# ----------------------------------------------------------------------------
def _ref_basic_block(x, p, stride, eps=1e-5):
    def conv(y, w, s, pad):
        return jax.lax.conv_general_dilated(
            y, w, window_strides=(s, s), padding=pad,
            dimension_numbers=("NCHW", "OIHW", "NCHW"))

    def bn(y, g, b, m, v):
        sc = g / jnp.sqrt(v + eps)
        bi = b - m * sc
        return y * sc[None, :, None, None] + bi[None, :, None, None]

    out = jax.nn.relu(bn(conv(x, p["conv1_w"], stride, ((1, 1), (1, 1))),
                         p["bn1_gamma"], p["bn1_beta"], p["bn1_mean"], p["bn1_var"]))
    out = bn(conv(out, p["conv2_w"], 1, ((1, 1), (1, 1))),
             p["bn2_gamma"], p["bn2_beta"], p["bn2_mean"], p["bn2_var"])
    if "sc_w" in p:
        sc = bn(conv(x, p["sc_w"], stride, ((0, 0), (0, 0))),
                p["sc_bn_gamma"], p["sc_bn_beta"], p["sc_bn_mean"], p["sc_bn_var"])
    else:
        sc = x
    return jax.nn.relu(out + sc)


def _make_params(key, in_planes, planes, stride):
    ks = jax.random.split(key, 16)
    p = {
        "conv1_w": jax.random.normal(ks[0], (planes, in_planes, 3, 3), jnp.float32) * 0.2,
        "bn1_gamma": jax.random.uniform(ks[1], (planes,), jnp.float32, 0.5, 1.5),
        "bn1_beta": jax.random.normal(ks[2], (planes,), jnp.float32) * 0.1,
        "bn1_mean": jax.random.normal(ks[3], (planes,), jnp.float32) * 0.1,
        "bn1_var": jax.random.uniform(ks[4], (planes,), jnp.float32, 0.5, 1.5),
        "conv2_w": jax.random.normal(ks[5], (planes, planes, 3, 3), jnp.float32) * 0.2,
        "bn2_gamma": jax.random.uniform(ks[6], (planes,), jnp.float32, 0.5, 1.5),
        "bn2_beta": jax.random.normal(ks[7], (planes,), jnp.float32) * 0.1,
        "bn2_mean": jax.random.normal(ks[8], (planes,), jnp.float32) * 0.1,
        "bn2_var": jax.random.uniform(ks[9], (planes,), jnp.float32, 0.5, 1.5),
    }
    if stride != 1 or in_planes != planes:
        p["sc_w"] = jax.random.normal(ks[10], (planes, in_planes, 1, 1), jnp.float32) * 0.2
        p["sc_bn_gamma"] = jax.random.uniform(ks[11], (planes,), jnp.float32, 0.5, 1.5)
        p["sc_bn_beta"] = jax.random.normal(ks[12], (planes,), jnp.float32) * 0.1
        p["sc_bn_mean"] = jax.random.normal(ks[13], (planes,), jnp.float32) * 0.1
        p["sc_bn_var"] = jax.random.uniform(ks[14], (planes,), jnp.float32, 0.5, 1.5)
    return p


if __name__ == "__main__":
    key = jax.random.PRNGKey(0)
    kx, kp1, kp2 = jax.random.split(key, 3)

    N, C, H, W = 2, 4, 16, 16
    x = jax.random.normal(kx, (N, C, H, W), dtype=jnp.float32)

    # Tolerances are loosened vs. an f32 reference because the MXU operands are bf16
    # (accumulation stays f32), per the performance guidance.
    ATOL, RTOL = 1e-1, 5e-2

    # Case A: stride=1, in_planes == planes  (identity shortcut)
    pA = _make_params(kp1, in_planes=C, planes=4, stride=1)
    outA = jax.block_until_ready(basic_block_resnet34(x, pA, stride=1))
    refA = _ref_basic_block(x, pA, stride=1)
    assert outA.shape == refA.shape and outA.dtype == x.dtype
    assert bool(jnp.allclose(outA, refA, atol=ATOL, rtol=RTOL)), \
        f"case A max err {jnp.max(jnp.abs(outA - refA))}"

    # Case B: stride=2, in_planes != planes  (1x1-conv + BN projection shortcut)
    pB = _make_params(kp2, in_planes=C, planes=8, stride=2)
    outB = jax.block_until_ready(basic_block_resnet34(x, pB, stride=2))
    refB = _ref_basic_block(x, pB, stride=2)
    assert outB.shape == refB.shape and outB.dtype == x.dtype
    assert bool(jnp.allclose(outB, refB, atol=ATOL, rtol=RTOL)), \
        f"case B max err {jnp.max(jnp.abs(outB - refB))}"

    print("KERNEL_OK")
</pallas_src>

<mosaic_0001>
module attributes {stable_mosaic.version = 11 : i64} {
  func.func @_conv3x3_bn_act_kernel(%arg0: i32, %arg1: i32, %arg2: memref<1x18x18x4xbf16, #tpu.memory_space<vmem>>, %arg3: memref<9x4x128xbf16, #tpu.memory_space<vmem>>, %arg4: memref<1x128xf32, #tpu.memory_space<vmem>>, %arg5: memref<1x256x128xbf16, #tpu.memory_space<vmem>>) attributes {dimension_semantics = [#tpu.dimension_semantics<parallel>, #tpu.dimension_semantics<parallel>], iteration_bounds = array<i64: 2, 1>, scalar_prefetch = 0 : i64, scratch_operands = 0 : i64, tpu.core_type = #tpu.core_type<tc>, window_params = [{transform_indices = @transform_0, window_bounds = array<i64: 1, 18, 18, 4>}, {transform_indices = @transform_1, window_bounds = array<i64: 9, 4, 128>}, {transform_indices = @transform_2, window_bounds = array<i64: 1, 128>}, {transform_indices = @transform_3, window_bounds = array<i64: 1, 256, 128>}]} {
    %cst = arith.constant 0.000000e+00 : f32
    %0 = vector.broadcast %cst : f32 to vector<256x128xf32>
    %c0 = arith.constant 0 : index
    %c0_0 = arith.constant 0 : index
    %c0_1 = arith.constant 0 : index
    %c0_2 = arith.constant 0 : index
    %1 = vector.load %arg2[%c0, %c0_0, %c0_1, %c0_2] : memref<1x18x18x4xbf16, #tpu.memory_space<vmem>>, vector<1x18x18x4xbf16>
    %2 = vector.shape_cast %1 : vector<1x18x18x4xbf16> to vector<18x18x4xbf16>
    %3 = arith.extf %2 : vector<18x18x4xbf16> to vector<18x18x4xf32>
    %4 = vector.extract_strided_slice %3 {offsets = [0, 0, 0], sizes = [16, 16, 4], strides = [1, 1, 1]} : vector<18x18x4xf32> to vector<16x16x4xf32>
    %5 = vector.shape_cast %4 : vector<16x16x4xf32> to vector<256x4xf32>
    %6 = arith.truncf %5 : vector<256x4xf32> to vector<256x4xbf16>
    %c0_3 = arith.constant 0 : index
    %c0_4 = arith.constant 0 : index
    %c0_5 = arith.constant 0 : index
    %7 = vector.load %arg3[%c0_3, %c0_4, %c0_5] : memref<9x4x128xbf16, #tpu.memory_space<vmem>>, vector<1x4x128xbf16>
    %8 = vector.shape_cast %7 : vector<1x4x128xbf16> to vector<4x128xbf16>
    %cst_6 = arith.constant dense<0.000000e+00> : vector<256x128xf32>
    %9 = tpu.matmul %6, %8, %cst_6 {dimension_numbers = #tpu.dot_dimension_numbers<[1], [0], [0], [1], [0, 0, 1, 1], [], []>} : vector<256x4xbf16>, vector<4x128xbf16>, vector<256x128xf32> -> vector<256x128xf32>
    %10 = arith.addf %0, %9 : vector<256x128xf32>
    %11 = vector.extract_strided_slice %3 {offsets = [0, 1, 0], sizes = [16, 16, 4], strides = [1, 1, 1]} : vector<18x18x4xf32> to vector<16x16x4xf32>
    %12 = vector.shape_cast %11 : vector<16x16x4xf32> to vector<256x4xf32>
    %13 = arith.truncf %12 : vector<256x4xf32> to vector<256x4xbf16>
    %c1 = arith.constant 1 : index
    %c0_7 = arith.constant 0 : index
    %c0_8 = arith.constant 0 : index
    %14 = vector.load %arg3[%c1, %c0_7, %c0_8] : memref<9x4x128xbf16, #tpu.memory_space<vmem>>, vector<1x4x128xbf16>
    %15 = vector.shape_cast %14 : vector<1x4x128xbf16> to vector<4x128xbf16>
    %cst_9 = arith.constant dense<0.000000e+00> : vector<256x128xf32>
    %16 = tpu.matmul %13, %15, %cst_9 {dimension_numbers = #tpu.dot_dimension_numbers<[1], [0], [0], [1], [0, 0, 1, 1], [], []>} : vector<256x4xbf16>, vector<4x128xbf16>, vector<256x128xf32> -> vector<256x128xf32>
    %17 = arith.addf %10, %16 : vector<256x128xf32>
    %18 = vector.extract_strided_slice %3 {offsets = [0, 2, 0], sizes = [16, 16, 4], strides = [1, 1, 1]} : vector<18x18x4xf32> to vector<16x16x4xf32>
    %19 = vector.shape_cast %18 : vector<16x16x4xf32> to vector<256x4xf32>
    %20 = arith.truncf %19 : vector<256x4xf32> to vector<256x4xbf16>
    %c2 = arith.constant 2 : index
    %c0_10 = arith.constant 0 : index
    %c0_11 = arith.constant 0 : index
    %21 = vector.load %arg3[%c2, %c0_10, %c0_11] : memref<9x4x128xbf16, #tpu.memory_space<vmem>>, vector<1x4x128xbf16>
    %22 = vector.shape_cast %21 : vector<1x4x128xbf16> to vector<4x128xbf16>
    %cst_12 = arith.constant dense<0.000000e+00> : vector<256x128xf32>
    %23 = tpu.matmul %20, %22, %cst_12 {dimension_numbers = #tpu.dot_dimension_numbers<[1], [0], [0], [1], [0, 0, 1, 1], [], []>} : vector<256x4xbf16>, vector<4x128xbf16>, vector<256x128xf32> -> vector<256x128xf32>
    %24 = arith.addf %17, %23 : vector<256x128xf32>
    %25 = vector.extract_strided_slice %3 {offsets = [1, 0, 0], sizes = [16, 16, 4], strides = [1, 1, 1]} : vector<18x18x4xf32> to vector<16x16x4xf32>
    %26 = vector.shape_cast %25 : vector<16x16x4xf32> to vector<256x4xf32>
    %27 = arith.truncf %26 : vector<256x4xf32> to vector<256x4xbf16>
    %c3 = arith.constant 3 : index
    %c0_13 = arith.constant 0 : index
    %c0_14 = arith.constant 0 : index
    %28 = vector.load %arg3[%c3, %c0_13, %c0_14] : memref<9x4x128xbf16, #tpu.memory_space<vmem>>, vector<1x4x128xbf16>
    %29 = vector.shape_cast %28 : vector<1x4x128xbf16> to vector<4x128xbf16>
    %cst_15 = arith.constant dense<0.000000e+00> : vector<256x128xf32>
    %30 = tpu.matmul %27, %29, %cst_15 {dimension_numbers = #tpu.dot_dimension_numbers<[1], [0], [0], [1], [0, 0, 1, 1], [], []>} : vector<256x4xbf16>, vector<4x128xbf16>, vector<256x128xf32> -> vector<256x128xf32>
    %31 = arith.addf %24, %30 : vector<256x128xf32>
    %32 = vector.extract_strided_slice %3 {offsets = [1, 1, 0], sizes = [16, 16, 4], strides = [1, 1, 1]} : vector<18x18x4xf32> to vector<16x16x4xf32>
    %33 = vector.shape_cast %32 : vector<16x16x4xf32> to vector<256x4xf32>
    %34 = arith.truncf %33 : vector<256x4xf32> to vector<256x4xbf16>
    %c4 = arith.constant 4 : index
    %c0_16 = arith.constant 0 : index
    %c0_17 = arith.constant 0 : index
    %35 = vector.load %arg3[%c4, %c0_16, %c0_17] : memref<9x4x128xbf16, #tpu.memory_space<vmem>>, vector<1x4x128xbf16>
    %36 = vector.shape_cast %35 : vector<1x4x128xbf16> to vector<4x128xbf16>
    %cst_18 = arith.constant dense<0.000000e+00> : vector<256x128xf32>
    %37 = tpu.matmul %34, %36, %cst_18 {dimension_numbers = #tpu.dot_dimension_numbers<[1], [0], [0], [1], [0, 0, 1, 1], [], []>} : vector<256x4xbf16>, vector<4x128xbf16>, vector<256x128xf32> -> vector<256x128xf32>
    %38 = arith.addf %31, %37 : vector<256x128xf32>
    %39 = vector.extract_strided_slice %3 {offsets = [1, 2, 0], sizes = [16, 16, 4], strides = [1, 1, 1]} : vector<18x18x4xf32> to vector<16x16x4xf32>
    %40 = vector.shape_cast %39 : vector<16x16x4xf32> to vector<256x4xf32>
    %41 = arith.truncf %40 : vector<256x4xf32> to vector<256x4xbf16>
    %c5 = arith.constant 5 : index
    %c0_19 = arith.constant 0 : index
    %c0_20 = arith.constant 0 : index
    %42 = vector.load %arg3[%c5, %c0_19, %c0_20] : memref<9x4x128xbf16, #tpu.memory_space<vmem>>, vector<1x4x128xbf16>
    %43 = vector.shape_cast %42 : vector<1x4x128xbf16> to vector<4x128xbf16>
    %cst_21 = arith.constant dense<0.000000e+00> : vector<256x128xf32>
    %44 = tpu.matmul %41, %43, %cst_21 {dimension_numbers = #tpu.dot_dimension_numbers<[1], [0], [0], [1], [0, 0, 1, 1], [], []>} : vector<256x4xbf16>, vector<4x128xbf16>, vector<256x128xf32> -> vector<256x128xf32>
    %45 = arith.addf %38, %44 : vector<256x128xf32>
    %46 = vector.extract_strided_slice %3 {offsets = [2, 0, 0], sizes = [16, 16, 4], strides = [1, 1, 1]} : vector<18x18x4xf32> to vector<16x16x4xf32>
    %47 = vector.shape_cast %46 : vector<16x16x4xf32> to vector<256x4xf32>
    %48 = arith.truncf %47 : vector<256x4xf32> to vector<256x4xbf16>
    %c6 = arith.constant 6 : index
    %c0_22 = arith.constant 0 : index
    %c0_23 = arith.constant 0 : index
    %49 = vector.load %arg3[%c6, %c0_22, %c0_23] : memref<9x4x128xbf16, #tpu.memory_space<vmem>>, vector<1x4x128xbf16>
    %50 = vector.shape_cast %49 : vector<1x4x128xbf16> to vector<4x128xbf16>
    %cst_24 = arith.constant dense<0.000000e+00> : vector<256x128xf32>
    %51 = tpu.matmul %48, %50, %cst_24 {dimension_numbers = #tpu.dot_dimension_numbers<[1], [0], [0], [1], [0, 0, 1, 1], [], []>} : vector<256x4xbf16>, vector<4x128xbf16>, vector<256x128xf32> -> vector<256x128xf32>
    %52 = arith.addf %45, %51 : vector<256x128xf32>
    %53 = vector.extract_strided_slice %3 {offsets = [2, 1, 0], sizes = [16, 16, 4], strides = [1, 1, 1]} : vector<18x18x4xf32> to vector<16x16x4xf32>
    %54 = vector.shape_cast %53 : vector<16x16x4xf32> to vector<256x4xf32>
    %55 = arith.truncf %54 : vector<256x4xf32> to vector<256x4xbf16>
    %c7 = arith.constant 7 : index
    %c0_25 = arith.constant 0 : index
    %c0_26 = arith.constant 0 : index
    %56 = vector.load %arg3[%c7, %c0_25, %c0_26] : memref<9x4x128xbf16, #tpu.memory_space<vmem>>, vector<1x4x128xbf16>
    %57 = vector.shape_cast %56 : vector<1x4x128xbf16> to vector<4x128xbf16>
    %cst_27 = arith.constant dense<0.000000e+00> : vector<256x128xf32>
    %58 = tpu.matmul %55, %57, %cst_27 {dimension_numbers = #tpu.dot_dimension_numbers<[1], [0], [0], [1], [0, 0, 1, 1], [], []>} : vector<256x4xbf16>, vector<4x128xbf16>, vector<256x128xf32> -> vector<256x128xf32>
    %59 = arith.addf %52, %58 : vector<256x128xf32>
    %60 = vector.extract_strided_slice %3 {offsets = [2, 2, 0], sizes = [16, 16, 4], strides = [1, 1, 1]} : vector<18x18x4xf32> to vector<16x16x4xf32>
    %61 = vector.shape_cast %60 : vector<16x16x4xf32> to vector<256x4xf32>
    %62 = arith.truncf %61 : vector<256x4xf32> to vector<256x4xbf16>
    %c8 = arith.constant 8 : index
    %c0_28 = arith.constant 0 : index
    %c0_29 = arith.constant 0 : index
    %63 = vector.load %arg3[%c8, %c0_28, %c0_29] : memref<9x4x128xbf16, #tpu.memory_space<vmem>>, vector<1x4x128xbf16>
    %64 = vector.shape_cast %63 : vector<1x4x128xbf16> to vector<4x128xbf16>
    %cst_30 = arith.constant dense<0.000000e+00> : vector<256x128xf32>
    %65 = tpu.matmul %62, %64, %cst_30 {dimension_numbers = #tpu.dot_dimension_numbers<[1], [0], [0], [1], [0, 0, 1, 1], [], []>} : vector<256x4xbf16>, vector<4x128xbf16>, vector<256x128xf32> -> vector<256x128xf32>
    %66 = arith.addf %59, %65 : vector<256x128xf32>
    %c0_31 = arith.constant 0 : index
    %c0_32 = arith.constant 0 : index
    %67 = vector.load %arg4[%c0_31, %c0_32] : memref<1x128xf32, #tpu.memory_space<vmem>>, vector<1x128xf32>
    %68 = vector.broadcast %67 : vector<1x128xf32> to vector<256x128xf32>
    %69 = arith.addf %66, %68 : vector<256x128xf32>
    %cst_33 = arith.constant 0.000000e+00 : f32
    %70 = vector.broadcast %cst_33 : f32 to vector<256x128xf32>
    %71 = arith.maximumf %69, %70 : vector<256x128xf32>
    %72 = arith.truncf %71 : vector<256x128xf32> to vector<256x128xbf16>
    %c0_34 = arith.constant 0 : index
    %c0_35 = arith.constant 0 : index
    %c0_36 = arith.constant 0 : index
    %73 = vector.load %arg5[%c0_34, %c0_35, %c0_36] : memref<1x256x128xbf16, #tpu.memory_space<vmem>>, vector<1x256x128xbf16>
    %74 = vector.shape_cast %73 : vector<1x256x128xbf16> to vector<256x128xbf16>
    %75 = vector.shape_cast %72 : vector<256x128xbf16> to vector<1x256x128xbf16>
    tpu.vector_store %arg5[%c0_34, %c0_35, %c0_36], %75 {strides = array<i32>} : memref<1x256x128xbf16, #tpu.memory_space<vmem>>, vector<1x256x128xbf16>,
    return
  }
  func.func @transform_0(%arg0: i32, %arg1: i32) -> (i32, i32, i32, i32) {
    %c0_i32 = arith.constant 0 : i32
    %c0_i32_0 = arith.constant 0 : i32
    %c0_i32_1 = arith.constant 0 : i32
    %c0_i32_2 = arith.constant 0 : i32
    return %arg0, %c0_i32, %c0_i32_0, %c0_i32_1 : i32, i32, i32, i32
  }
  func.func @transform_1(%arg0: i32, %arg1: i32) -> (i32, i32, i32) {
    %c0_i32 = arith.constant 0 : i32
    %c0_i32_0 = arith.constant 0 : i32
    %c0_i32_1 = arith.constant 0 : i32
    return %c0_i32, %c0_i32_0, %arg1 : i32, i32, i32
  }
  func.func @transform_2(%arg0: i32, %arg1: i32) -> (i32, i32) {
    %c0_i32 = arith.constant 0 : i32
    %c0_i32_0 = arith.constant 0 : i32
    return %c0_i32, %arg1 : i32, i32
  }
  func.func @transform_3(%arg0: i32, %arg1: i32) -> (i32, i32, i32) {
    %c0_i32 = arith.constant 0 : i32
    %c0_i32_0 = arith.constant 0 : i32
    return %arg0, %c0_i32, %arg1 : i32, i32, i32
  }
}

module attributes {stable_mosaic.version = 11 : i64} {
  func.func @_gemm_bn_act_kernel(%arg0: i32, %arg1: i32, %arg2: memref<128x36xbf16, #tpu.memory_space<vmem>>, %arg3: memref<36x128xbf16, #tpu.memory_space<vmem>>, %arg4: memref<1x128xf32, #tpu.memory_space<vmem>>, %arg5: memref<128x128xbf16, #tpu.memory_space<vmem>>, %arg6: memref<128x128xf32, #tpu.memory_space<vmem>>) attributes {dimension_semantics = [#tpu.dimension_semantics<parallel>, #tpu.dimension_semantics<arbitrary>], iteration_bounds = array<i64: 4, 1>, scalar_prefetch = 0 : i64, scratch_operands = 1 : i64, tpu.core_type = #tpu.core_type<tc>, window_params = [{transform_indices = @transform_0, window_bounds = array<i64: 128, 36>}, {transform_indices = @transform_1, window_bounds = array<i64: 36, 128>}, {pipeline_mode = #tpu.pipeline_mode<synchronous>, transform_indices = @transform_2, window_bounds = array<i64: 1, 128>}, {transform_indices = @transform_3, window_bounds = array<i64: 128, 128>}]} {
    %c0_i32 = arith.constant 0 : i32
    %0 = arith.cmpi eq, %arg1, %c0_i32 : i32
    %1 = arith.extui %0 : i1 to i32
    %c0_i32_0 = arith.constant 0 : i32
    %2 = arith.cmpi ne, %1, %c0_i32_0 : i32
    scf.if %2 {
      %cst_10 = arith.constant 0.000000e+00 : f32
      %12 = vector.broadcast %cst_10 : f32 to vector<128x128xf32>
      %c0_11 = arith.constant 0 : index
      %c0_12 = arith.constant 0 : index
      %13 = vector.load %arg6[%c0_11, %c0_12] : memref<128x128xf32, #tpu.memory_space<vmem>>, vector<128x128xf32>
      tpu.vector_store %arg6[%c0_11, %c0_12], %12 {strides = array<i32>} : memref<128x128xf32, #tpu.memory_space<vmem>>, vector<128x128xf32>,
    } else {
    }
    %c0 = arith.constant 0 : index
    %c0_1 = arith.constant 0 : index
    %3 = vector.load %arg6[%c0, %c0_1] : memref<128x128xf32, #tpu.memory_space<vmem>>, vector<128x128xf32>
    %c0_2 = arith.constant 0 : index
    %c0_3 = arith.constant 0 : index
    %4 = vector.load %arg2[%c0_2, %c0_3] : memref<128x36xbf16, #tpu.memory_space<vmem>>, vector<128x36xbf16>
    %c0_4 = arith.constant 0 : index
    %c0_5 = arith.constant 0 : index
    %5 = vector.load %arg3[%c0_4, %c0_5] : memref<36x128xbf16, #tpu.memory_space<vmem>>, vector<36x128xbf16>
    %cst = arith.constant dense<0.000000e+00> : vector<128x128xf32>
    %6 = tpu.matmul %4, %5, %cst {dimension_numbers = #tpu.dot_dimension_numbers<[1], [0], [0], [1], [0, 0, 1, 1], [], []>} : vector<128x36xbf16>, vector<36x128xbf16>, vector<128x128xf32> -> vector<128x128xf32>
    %7 = arith.addf %3, %6 : vector<128x128xf32>
    %c0_6 = arith.constant 0 : index
    %c0_7 = arith.constant 0 : index
    %8 = vector.load %arg6[%c0_6, %c0_7] : memref<128x128xf32, #tpu.memory_space<vmem>>, vector<128x128xf32>
    tpu.vector_store %arg6[%c0_6, %c0_7], %7 {strides = array<i32>} : memref<128x128xf32, #tpu.memory_space<vmem>>, vector<128x128xf32>,
    %c0_i32_8 = arith.constant 0 : i32
    %9 = arith.cmpi eq, %arg1, %c0_i32_8 : i32
    %10 = arith.extui %9 : i1 to i32
    %c0_i32_9 = arith.constant 0 : i32
    %11 = arith.cmpi ne, %10, %c0_i32_9 : i32
    scf.if %11 {
      %c0_10 = arith.constant 0 : index
      %c0_11 = arith.constant 0 : index
      %12 = vector.load %arg6[%c0_10, %c0_11] : memref<128x128xf32, #tpu.memory_space<vmem>>, vector<128x128xf32>
      %c0_12 = arith.constant 0 : index
      %c0_13 = arith.constant 0 : index
      %13 = vector.load %arg4[%c0_12, %c0_13] : memref<1x128xf32, #tpu.memory_space<vmem>>, vector<1x128xf32>
      %14 = vector.broadcast %13 : vector<1x128xf32> to vector<128x128xf32>
      %15 = arith.addf %12, %14 : vector<128x128xf32>
      %cst_14 = arith.constant 0.000000e+00 : f32
      %16 = vector.broadcast %cst_14 : f32 to vector<128x128xf32>
      %17 = arith.maximumf %15, %16 : vector<128x128xf32>
      %18 = arith.truncf %17 : vector<128x128xf32> to vector<128x128xbf16>
      %c0_15 = arith.constant 0 : index
      %c0_16 = arith.constant 0 : index
      %19 = vector.load %arg5[%c0_15, %c0_16] : memref<128x128xbf16, #tpu.memory_space<vmem>>, vector<128x128xbf16>
      tpu.vector_store %arg5[%c0_15, %c0_16], %18 {strides = array<i32>} : memref<128x128xbf16, #tpu.memory_space<vmem>>, vector<128x128xbf16>,
    } else {
    }
    return
  }
  func.func @transform_0(%arg0: i32, %arg1: i32) -> (i32, i32) {
    %c0_i32 = arith.constant 0 : i32
    return %arg0, %arg1 : i32, i32
  }
  func.func @transform_1(%arg0: i32, %arg1: i32) -> (i32, i32) {
    %c0_i32 = arith.constant 0 : i32
    %c0_i32_0 = arith.constant 0 : i32
    return %arg1, %c0_i32 : i32, i32
  }
  func.func @transform_2(%arg0: i32, %arg1: i32) -> (i32, i32) {
    %c0_i32 = arith.constant 0 : i32
    %c0_i32_0 = arith.constant 0 : i32
    %c0_i32_1 = arith.constant 0 : i32
    return %c0_i32, %c0_i32_0 : i32, i32
  }
  func.func @transform_3(%arg0: i32, %arg1: i32) -> (i32, i32) {
    %c0_i32 = arith.constant 0 : i32
    %c0_i32_0 = arith.constant 0 : i32
    return %arg0, %c0_i32 : i32, i32
  }
}

</mosaic_0001>

<bundles_post_ra>
// kernel: tpu_custom_call.1
= control target key start
LH: loop header
LB: loop body
LE: loop exit
PB: predicated region body
PF: predicated region fallthrough
CT: control target
= control target key end

     0   :  { %8 = vsyncpa [#allocation3], 0  ;;  %s5217_s0 = inlined_call_operand.vmem [shape: bf16[2,18,18,4], index: 0, kind: input, shape index: {}]   ;;  %s5218_s1 = inlined_call_operand.vmem [shape: bf16[9,4,128], index: 1, kind: input, shape index: {}]   ;;  %s5219_s2 = inlined_call_operand.vmem [shape: f32[1,128], index: 2, kind: input, shape index: {}]   ;;  %s5220_s3 = inlined_call_operand.hbm [shape: bf16[2,256,128], index: 3, kind: output, shape index: {}]  }
   0x1   :  { %10 = vsyncpa [#allocation3 + $0x1], 0  ;;  %s4180_s12 = smov 0   ;;  %s4182_s13 = smov 0  }
   0x2   :  { %s4184_s14 = smov 0   ;;  %s4186_s15 = smov 0  }
   0x3   :  { %s4188_s16 = smov 0   ;;  %s4190_s17 = smov 0  }
   0x4 LB: > { %s2911_s18 = sadd.s32 4294967295, %s4155_s17   ;;  %s2912_s19 = sadd.s32 4294967294, %s4155_s17   ;;  %s4155_s17 = sphi %s4190_s17, %s16_s17   ;;  %s4151_s16 = sphi %s4188_s16, %s5306_s16   ;;  %s4147_s15 = sphi %s4186_s15, %s5305_s15   ;;  %s4143_s14 = sphi %s4184_s14, %s5304_s14   ;;  %s4139_s13 = sphi %s4182_s13, %s5303_s13   ;;  %s4135_s12 = sphi %s4180_s12, %s5302_s12  }
   0x5   : > { %s28_s20 = sadd.s32 1, %s4151_s16  ;;  %s115_s21 = sadd.s32 1, %s4143_s14 }
   0x6   : > { %p30_p0 = scmp.ge.s32.totalorder %s28_s20, 2  ;;  %p125_p1 = scmp.ne.s32.totalorder %s4143_s14, %s4139_s13 }
   0x7   : > { %p126_p2 = scmp.eq.s32.totalorder %s2911_s18, 1  ;;  %p131_p3 = scmp.ne.s32.totalorder %s4139_s13, %s4135_s12 }
   0x8   : > { %s5308_s20 = smov (%p30_p0, %s28_s20), 0  ;;  %p132_p5 = scmp.eq.s32.totalorder %s2912_s19, 1 }
   0x9   : > { %p4220_p4 = por %p126_p2, %p125_p1  ;;  %s110_s23 = ssub.s32 %s4151_s16, %s5308_s20 }
   0xa   : > { %p2917_p6 = scmp.ge.s32.totalorder %s4155_s17, 1  ;;  %p113_p7 = scmp.eq.s32.totalorder %s110_s23, 0 }
   0xb   : > { %p4227_p8 = por %p132_p5, %p131_p3  ;;  %p171_p9 = scmp.lt.s32.totalorder %s4155_s17, 3 }
   0xc   : > { %s4233_s25 = scalar_select %p113_p7, %s4143_s14, %s115_s21  }
   0xd   : > { %p172_p10 = pnand %p2917_p6, %p171_p9 }
   0xf   : > { %175 = sbr.rel (%p172_p10) target bundleno = 559 (0x22f), region = 32 }
  0x16   : > { %v2936_v0 = vld [vmem:[%s5218_s1 + $0x2] sm:$0x3]  ;;  %vm568_vm0 = vcmask 1041408   ;;  %v4241_v1 = vld [vmem:[%s5218_s1 + $0x8] sm:$0x3]  ;;  %p202_p11 = scmp.lt.s32.totalorder %s4147_s15, 1 }
  0x17   : > { %3973 = vmatprep.subr.msk.bf16.mxu1 %vm568_vm0, %v2936_v0  ;;  %3977 = vmatprep.subr.msk.bf16.mxu0 %vm568_vm0, %v4241_v1  ;;  %v570_v2 = vsel %vm568_vm0, %v2936_v0, 0  ;;  %v4250_v3 = vsel %vm568_vm0, %v4241_v1, 0  ;;  %v339_v4 = vld [vmem:[%s5218_s1] sm:$0x3]  ;;  %v3021_v5 = vld [vmem:[%s5218_s1 + $0xa] sm:$0x3] }
  0x18   : > { %5261 = vst [vmem:[#allocation5_spill] sm:$0xff] %v4250_v3  ;;  %3410 = vmatpush3.bf16.msra.mxu1 %v570_v2  ;;  %3546 = vmatpush3.bf16.msra.mxu0 %v4250_v3  ;;  %s203_s5 = scalar_select %p202_p11, %s4147_s15, 1  ;;  %vm388_vm1 = vcmask 1046528   ;;  %vm519_vm2 = vcmask 31744   ;;  %v782_v37 = vsel %vm568_vm0, %v339_v4, 0  ;;  %v1748_v43 = vsel %vm568_vm0, %v3021_v5, 0 }
  0x19   : > { %3974 = vmatprep.subr.msk.bf16.mxu1 %vm568_vm0, %v339_v4  ;;  %3979 = vmatprep.subr.msk.bf16.mxu0 %vm568_vm0, %v3021_v5  ;;  %v4336_v44 = vld [vmem:[%s5218_s1 + $0x4] sm:$0x3]  ;;  %v4380_v2 = vld [vmem:[%s5218_s1 + $0xc] sm:$0x3]  ;;  %vm945_vm3 = vcmask 1045504   ;;  %s199_s7 = sand.u32 1, %s4139_s13  }
  0x1a   : > { %s3983_s8 = smul.u32 216, %s203_s5  ;;  %s3160_s10 = sshll.u32 %s4147_s15, 11 }
  0x1b   : > { %s5163_s21 = scalar_lea.hbm %s5220_s3, %s3160_s10  ;;  %s5171_s15 = scalar_lea.sflag [#allocation3], %s199_s7 }
  0x1c   : > { %s4265_s11 = scalar_lea.vmem %s5217_s0, %s3983_s8  ;;  %s2918_s8 = sshll.u32 %s199_s7, 7 }
  0x1d   : > { %v4268_v6 = vld [vmem:[%s4265_s11] sm:$0xff]   ;;  %v4271_v7 = vld [vmem:[%s4265_s11 + $0x8] sm:$0x1]  ;;  %v4274_v8 = vld [vmem:[%s4265_s11 + $0xc] sm:$0xff]   ;;  %s5110_s9 = scalar_lea.vmem [#allocation2], %s2918_s8  ;;  %s4157_s26 = smov [#allocation2]  }
  0x1e   : > { %v5223_v9 = vunpack.c.l.bf16 %v4268_v6  ;;  %v5222_v10 = vunpack.c.h.bf16 %v4268_v6  ;;  %v5221_v11 = vunpack.c.l.bf16 %v4271_v7  ;;  %v4280_v12 = vld [vmem:[%s4265_s11 + $0x14] sm:$0x1]  ;;  %v272_v13 = vunpack.c.l.bf16 %v4274_v8  ;;  %v4284_v14 = vld [vmem:[%s4265_s11 + $0x18] sm:$0xff]   ;;  %v4300_v23 = vld [vmem:[%s4265_s11 + $0x20] sm:$0x1]  ;;  %s4081_s27 = sshll.u32 %s4157_s26, 4  ;;  %s4082_s27 = int_to_ptr.vmem [resolvable:$false] %s4081_s27 }
  0x1f   : > { %v273_v15 = vunpack.c.h.bf16 %v4274_v8  ;;  %v274_v16 = vunpack.c.l.bf16 %v4280_v12  ;;  %v275_v20 = vunpack.c.l.bf16 %v4284_v14  ;;  %v4307_v27 = vld [vmem:[%s4265_s11 + $0x24] sm:$0xff]   ;;  %v276_v31 = vunpack.c.h.bf16 %v4284_v14  ;;  %v4316_v34 = vld [vmem:[%s4265_s11 + $0x2c] sm:$0x1]  ;;  %v4319_v35 = vld [vmem:[%s4265_s11 + $0x30] sm:$0xff]   ;;  %s4083_s28 = scalar_lea.vmem %s4082_s27, 4096 }
  0x20   : > { %v389_v17 = vrot.slane %v5223_v9, 1  ;;  %v390_v18 = vrot.slane %v5222_v10, 1  ;;  %v392_v19 = vrot.slane %v5221_v11, 1  ;;  %v394_v21 = vrot.slane %v272_v13, 1  ;;  %v4326_v40 = vld [vmem:[%s4265_s11 + $0x38] sm:$0x1] }
  0x21   : > { %v395_v22 = vrot.slane %v273_v15, 1  ;;  %v397_v26 = vrot.slane %v274_v16, 1  ;;  %v277_v32 = vunpack.c.l.bf16 %v4300_v23  ;;  %v399_v33 = vrot.slane %v275_v20, 1  ;;  %v4347_v49 = vld [vmem:[%s4265_s11 + $0x3c] sm:$0xff]   ;;  %v4354_v54 = vld [vmem:[%s4265_s11 + $0x44] sm:$0x1] }
  0x22   : > { %v391_v24 = vsel %vm388_vm1, %v389_v17, %v390_v18  ;;  %v393_v25 = vsel %vm388_vm1, %v390_v18, %v392_v19  ;;  %v278_v38 = vunpack.c.l.bf16 %v4307_v27  ;;  %v279_v39 = vunpack.c.h.bf16 %v4307_v27  ;;  %v4357_v55 = vld [vmem:[%s4265_s11 + $0x48] sm:$0xff]   ;;  %v4375_v0 = vld [vmem:[%s4265_s11 + $0x50] sm:$0x1]  ;;  %v4391_v19 = vld [vmem:[%s4265_s11 + $0x54] sm:$0xff]  }
  0x23   : > { %v501_v28 = vpack.c.bf16 %v393_v25, %v391_v24  ;;  %v396_v29 = vsel %vm388_vm1, %v394_v21, %v395_v22  ;;  %v398_v30 = vsel %vm388_vm1, %v395_v22, %v397_v26  ;;  %v400_v41 = vrot.slane %v276_v31, 1  ;;  %v4400_v26 = vld [vmem:[%s4265_s11 + $0x5c] sm:$0x1] }
  0x24   : > { %v502_v36 = vpack.c.bf16 %v398_v30, %v396_v29  ;;  %v402_v42 = vrot.slane %v277_v32, 1  ;;  %v280_v45 = vunpack.c.l.bf16 %v4316_v34  ;;  %v404_v46 = vrot.slane %v278_v38, 1 }
  0x25   : > { %3411 = vmatprep.mubr.msk.bf16.mxu1 %vm519_vm2, %v501_v28  ;;  %v405_v47 = vrot.slane %v279_v39, 1  ;;  %v281_v48 = vunpack.c.l.bf16 %v4319_v35  ;;  %v401_v50 = vsel %vm388_vm1, %v399_v33, %v400_v41  ;;  %v282_v52 = vunpack.c.h.bf16 %v4319_v35 }
  0x26   : > { %3547 = vmatprep.mubr.msk.bf16.mxu0 %vm519_vm2, %v502_v36  ;;  %3412 = vmatmul.mubr.msk.bf16.vlgmr.msra.gmra.mrb[0].mxu1 %vm519_vm2, %v502_v36  ;;  %v403_v51 = vsel %vm388_vm1, %v400_v41, %v402_v42  ;;  %v283_v53 = vunpack.c.l.bf16 %v4326_v40  ;;  %v407_v58 = vrot.slane %v280_v45, 1  ;;  %v284_v62 = vunpack.c.l.bf16 %v4347_v49 }
  0x27   : > { %3444 = vmatpush3.bf16.msra.mxu1 %v782_v37  ;;  %v4359_v56 = vpack.c.bf16 %v403_v51, %v401_v50  ;;  %v406_v57 = vsel %vm388_vm1, %v404_v46, %v405_v47  ;;  %v409_v59 = vrot.slane %v281_v48, 1  ;;  %v410_v60 = vrot.slane %v282_v52, 1  ;;  %v4427_v51 = vld [vmem:[%s4265_s11 + $0x60] sm:$0xff]  }
  0x28   : > { %3975 = vmatprep.subr.msk.bf16.mxu1 %vm568_vm0, %v4336_v44  ;;  %v412_v61 = vrot.slane %v283_v53, 1  ;;  %v285_v63 = vunpack.c.h.bf16 %v4347_v49  ;;  %v408_v4 = vsel %vm388_vm1, %v405_v47, %v407_v58  ;;  %v5239_v5 = vunpack.c.l.bf16 %v4354_v54  ;;  %v4434_v58 = vld [vmem:[%s4265_s11 + $0x68] sm:$0x1] }
  0x29   : > { %3548 = vmatmul.mubr.msk.bf16.vlgmr.msra.gmra.mrb[0].mxu0 %vm519_vm2, %v4359_v56  ;;  %3415 = vmatprep.mubr.msk.bf16.mxu1 %vm519_vm2, %v4359_v56  ;;  %v5238_v17 = vunpack.c.l.bf16 %v4357_v55  ;;  %v5233_v18 = vunpack.c.h.bf16 %v4357_v55  ;;  %v4393_v21 = vpack.c.bf16 %v408_v4, %v406_v57  ;;  %v411_v22 = vsel %vm388_vm1, %v409_v59, %v410_v60 }
  0x2a   : > { %3580 = vmatpush3.bf16.msra.mxu0 %v1748_v43  ;;  %v413_v24 = vsel %vm388_vm1, %v410_v60, %v412_v61  ;;  %v414_v25 = vrot.slane %v284_v62, 1  ;;  %v415_v29 = vrot.slane %v285_v63, 1  ;;  %v417_v30 = vrot.slane %v5239_v5, 1 }
  0x2b   : > { %v4402_v28 = vpack.c.bf16 %v413_v24, %v411_v22  ;;  %v5230_v33 = vunpack.c.l.bf16 %v4375_v0  ;;  %3980 = vmatprep.subr.msk.bf16.mxu0 %vm568_vm0, %v4380_v2  ;;  %3551 = vmatprep.mubr.msk.bf16.mxu0 %vm519_vm2, %v4393_v21  ;;  %v419_v36 = vrot.slane %v5238_v17, 1  ;;  %v420_v37 = vrot.slane %v5233_v18, 1 }
  0x2c   : > { %v5229_v41 = vunpack.c.l.bf16 %v4391_v19  ;;  %v5228_v42 = vunpack.c.h.bf16 %v4391_v19  ;;  %v416_v43 = vsel %vm388_vm1, %v414_v25, %v415_v29  ;;  %v418_v46 = vsel %vm388_vm1, %v415_v29, %v417_v30  ;;  %v4452_v30 = vld [vmem:[%s4265_s11 + $0x6c] sm:$0xff]  }
  0x2d   : > { %v422_v47 = vrot.slane %v5230_v33, 1  ;;  %v5224_v50 = vunpack.c.l.bf16 %v4400_v26  ;;  %v4431_v57 = vpack.c.bf16 %v418_v46, %v416_v43  ;;  %v5227_v4 = vunpack.c.l.bf16 %v4427_v51 }
  0x2e   : > { %3416 = vmatmul.mubr.msk.bf16.gmra.mrb[4].mxu1 %vm519_vm2, %v4393_v21  ;;  %v424_v59 = vrot.slane %v5229_v41, 1  ;;  %v425_v60 = vrot.slane %v5228_v42, 1  ;;  %v421_v22 = vsel %vm388_vm1, %v419_v36, %v420_v37  ;;  %v5226_v25 = vunpack.c.h.bf16 %v4427_v51  ;;  %v4459_v36 = vld [vmem:[%s4265_s11 + $0x74] sm:$0x1] }
  0x2f   : > { %3419 = vmatprep.mubr.msk.bf16.mxu1 %vm519_vm2, %v4402_v28  ;;  %v427_v61 = vrot.slane %v5224_v50, 1  ;;  %v423_v24 = vsel %vm388_vm1, %v420_v37, %v422_v47  ;;  %v5225_v29 = vunpack.c.l.bf16 %v4434_v58  ;;  %v951_v43 = vrot.slane %v272_v13, 2  ;;  %v4470_v50 = vld [vmem:[%s4265_s11 + $0x78] sm:$0xff]   ;;  %v4473_v13 = vld [vmem:[%s4265_s11 + $0x80] sm:$0x1] }
  0x30   : > { %v426_v46 = vsel %vm388_vm1, %v424_v59, %v425_v60  ;;  %v952_v37 = vrot.slane %v273_v15, 2  ;;  %v954_v47 = vrot.slane %v274_v16, 2  ;;  %v4465_v10 = vpack.c.bf16 %v423_v24, %v421_v22 }
  0x31   : > { %3552 = vmatmul.mubr.msk.bf16.gmra.mrb[4].mxu0 %vm519_vm2, %v4402_v28  ;;  %v428_v11 = vsel %vm388_vm1, %v425_v60, %v427_v61  ;;  %v429_v9 = vrot.slane %v5227_v4, 1  ;;  %v430_v59 = vrot.slane %v5226_v25, 1  ;;  %v432_v15 = vrot.slane %v5225_v29, 1 }
  0x32   : > { %3555 = vmatprep.mubr.msk.bf16.mxu0 %vm519_vm2, %v4431_v57  ;;  %v5232_v12 = vunpack.c.l.bf16 %v4452_v30  ;;  %v5231_v16 = vunpack.c.h.bf16 %v4452_v30  ;;  %v4485_v60 = vpack.c.bf16 %v428_v11, %v426_v46  ;;  %v5237_v61 = vunpack.c.l.bf16 %v4459_v36 }
  0x33   : > { %v956_v22 = vrot.slane %v275_v20, 2  ;;  %v5235_v24 = vunpack.c.l.bf16 %v4470_v50  ;;  %v5234_v29 = vunpack.c.h.bf16 %v4470_v50  ;;  %v5236_v25 = vunpack.c.l.bf16 %v4473_v13 }
  0x34   : > { %v957_v4 = vrot.slane %v276_v31, 2  ;;  %v959_v42 = vrot.slane %v277_v32, 2  ;;  %v953_v11 = vsel %vm945_vm3, %v951_v43, %v952_v37  ;;  %v955_v46 = vsel %vm945_vm3, %v952_v37, %v954_v47  ;;  %v4508_v31 = vld [vmem:[%s4265_s11 + $0x84] sm:$0xff]   ;;  %v4511_v32 = vld [vmem:[%s4265_s11 + $0x8c] sm:$0x1] }
  0x35   : > { %v431_v20 = vsel %vm388_vm1, %v429_v9, %v430_v59  ;;  %v433_v41 = vsel %vm388_vm1, %v430_v59, %v432_v15  ;;  %v434_v33 = vrot.slane %v5232_v12, 1  ;;  %v435_v23 = vrot.slane %v5231_v16, 1  ;;  %v4526_v15 = vld [vmem:[%s4265_s11 + $0x90] sm:$0xff]  }
  0x36   : > { %3420 = vmatmul.mubr.msk.bf16.gmra.mrb[8].mxu1 %vm519_vm2, %v4431_v57  ;;  %v437_v43 = vrot.slane %v5237_v61, 1  ;;  %v4517_v9 = vpack.c.bf16 %v955_v46, %v953_v11  ;;  %v439_v37 = vrot.slane %v5235_v24, 1  ;;  %v440_v47 = vrot.slane %v5234_v29, 1  ;;  %v4534_v46 = vld [vmem:[%s4265_s11 + $0x98] sm:$0x1] }
  0x37   : > { %3423 = vmatprep.mubr.msk.bf16.mxu1 %vm519_vm2, %v4465_v10  ;;  %v442_v59 = vrot.slane %v5236_v25, 1  ;;  %v4528_v16 = vpack.c.bf16 %v433_v41, %v431_v20  ;;  %v5245_v12 = vunpack.c.l.bf16 %v4508_v31  ;;  %v5244_v18 = vunpack.c.h.bf16 %v4508_v31 }
  0x38   : > { %v5240_v11 = vunpack.c.l.bf16 %v4511_v32  ;;  %v436_v29 = vsel %vm388_vm1, %v434_v33, %v435_v23  ;;  %v958_v24 = vsel %vm945_vm3, %v956_v22, %v957_v4  ;;  %v960_v25 = vsel %vm945_vm3, %v957_v4, %v959_v42 }
  0x39   : > { %3556 = vmatmul.mubr.msk.bf16.gmra.mrb[8].mxu0 %vm519_vm2, %v4465_v10  ;;  %v961_v41 = vrot.slane %v278_v38, 2  ;;  %v438_v20 = vsel %vm388_vm1, %v435_v23, %v437_v43  ;;  %v962_v61 = vrot.slane %v279_v39, 2  ;;  %v5243_v17 = vunpack.c.l.bf16 %v4526_v15 }
  0x3a   : > { %3559 = vmatprep.mubr.msk.bf16.mxu0 %vm519_vm2, %v4485_v60  ;;  %v5241_v5 = vunpack.c.h.bf16 %v4526_v15  ;;  %v441_v33 = vsel %vm388_vm1, %v439_v37, %v440_v47  ;;  %v443_v42 = vsel %vm388_vm1, %v440_v47, %v442_v59  ;;  %v964_v38 = vrot.slane %v280_v45, 2 }
  0x3b   : > { %v5242_v4 = vunpack.c.l.bf16 %v4534_v46  ;;  %v444_v22 = vrot.slane %v5245_v12, 1  ;;  %v445_v39 = vrot.slane %v5244_v18, 1  ;;  %v447_v23 = vrot.slane %v5240_v11, 1  ;;  %v4577_v11 = vld [vmem:[%s4265_s11 + $0x9c] sm:$0xff]  }
  0x3c   : > { %v4563_v43 = vpack.c.bf16 %v438_v20, %v436_v29  ;;  %v4565_v37 = vpack.c.bf16 %v960_v25, %v958_v24  ;;  %v4569_v34 = vpack.c.bf16 %v443_v42, %v441_v33  ;;  %v963_v45 = vsel %vm945_vm3, %v961_v41, %v962_v61  ;;  %v4587_v41 = vld [vmem:[%s4265_s11 + $0xa4] sm:$0x1] }
  0x3d   : > { %v449_v47 = vrot.slane %v5243_v17, 1  ;;  %v450_v59 = vrot.slane %v5241_v5, 1  ;;  %v965_v25 = vsel %vm945_vm3, %v962_v61, %v964_v38  ;;  %v966_v29 = vrot.slane %v281_v48, 2  ;;  %v4596_v38 = vld [vmem:[%s4265_s11 + $0xa8] sm:$0xff]   ;;  %v4599_v48 = vld [vmem:[%s4265_s11 + $0xb0] sm:$0x1] }
  0x3e   : > { %3424 = vmatmul.mubr.msk.bf16.gmra.mrb[12].mxu1 %vm519_vm2, %v4485_v60  ;;  %v967_v24 = vrot.slane %v282_v52, 2  ;;  %v452_v20 = vrot.slane %v5242_v4, 1  ;;  %v446_v33 = vsel %vm388_vm1, %v444_v22, %v445_v39  ;;  %v448_v42 = vsel %vm388_vm1, %v445_v39, %v447_v23 }
  0x3f   : > { %3427 = vmatprep.mubr.msk.bf16.mxu1 %vm519_vm2, %v4528_v16  ;;  %v969_v5 = vrot.slane %v283_v53, 2  ;;  %v971_v61 = vrot.slane %v284_v62, 2  ;;  %v972_v52 = vrot.slane %v285_v63, 2  ;;  %v5262_v22 = vunpack.c.l.bf16 %v4354_v54 }
  0x40   : > { %v5251_v39 = vunpack.c.l.bf16 %v4577_v11  ;;  %v5250_v40 = vunpack.c.h.bf16 %v4577_v11  ;;  %v1950_v53 = vsel %vm568_vm0, %v4380_v2, 0  ;;  %v4613_v62 = vpack.c.bf16 %v965_v25, %v963_v45 }
  0x41   : > { %3560 = vmatmul.mubr.msk.bf16.gmra.mrb[12].mxu0 %vm519_vm2, %v4528_v16  ;;  %v974_v4 = vrot.slane %v5262_v22, 2  ;;  %v451_v23 = vsel %vm388_vm1, %v449_v47, %v450_v59  ;;  %v5248_v17 = vunpack.c.l.bf16 %v4587_v41  ;;  %v453_v63 = vsel %vm388_vm1, %v450_v59, %v452_v20  ;;  %v4628_v47 = vld [vmem:[%s5218_s1 + $0xe] sm:$0x3] }
  0x42   : > { %3581 = vmatprep.mubr.msk.bf16.mxu0 %vm519_vm2, %v4517_v9  ;;  %v5246_v54 = vunpack.c.l.bf16 %v4596_v38  ;;  %v5247_v22 = vunpack.c.h.bf16 %v4596_v38  ;;  %v5249_v18 = vunpack.c.l.bf16 %v4599_v48  ;;  %v4621_v12 = vpack.c.bf16 %v448_v42, %v446_v33 }
  0x43   : > { %v968_v2 = vsel %vm945_vm3, %v966_v29, %v967_v24  ;;  %v970_v45 = vsel %vm945_vm3, %v967_v24, %v969_v5  ;;  %v973_v59 = vsel %vm945_vm3, %v971_v61, %v972_v52  ;;  %v975_v25 = vsel %vm945_vm3, %v972_v52, %v974_v4  ;;  %v4653_v52 = vld [vmem:[%s4265_s11 + $0xb4] sm:$0xff]  }
  0x44   : > { %5263 = vst [vmem:[#allocation6_spill] sm:$0xff] %v4621_v12  ;;  %v454_v20 = vrot.slane %v5251_v39, 1  ;;  %v455_v29 = vrot.slane %v5250_v40, 1  ;;  %v4640_v5 = vpack.c.bf16 %v453_v63, %v451_v23  ;;  %v457_v24 = vrot.slane %v5248_v17, 1 }
  0x45   : > { %v4644_v33 = vpack.c.bf16 %v970_v45, %v968_v2  ;;  %v459_v4 = vrot.slane %v5246_v54, 1  ;;  %v460_v42 = vrot.slane %v5247_v22, 1  ;;  %v462_v61 = vrot.slane %v5249_v18, 1 }
  0x46   : > { %3428 = vmatmul.mubr.msk.bf16.gmra.mrb[16].mxu1 %vm519_vm2, %v4563_v43  ;;  %v4660_v23 = vpack.c.bf16 %v975_v25, %v973_v59  ;;  %v5264_v63 = vunpack.c.l.bf16 %v4357_v55  ;;  %v5265_v45 = vunpack.c.h.bf16 %v4357_v55  ;;  %v5266_v22 = vunpack.c.l.bf16 %v4375_v0 }
  0x47   : > { %3431 = vmatprep.mubr.msk.bf16.mxu1 %vm519_vm2, %v4569_v34  ;;  %v456_v18 = vsel %vm388_vm1, %v454_v20, %v455_v29  ;;  %v5267_v40 = vunpack.c.l.bf16 %v4391_v19  ;;  %v5268_v59 = vunpack.c.h.bf16 %v4391_v19  ;;  %v5269_v3 = vunpack.c.l.bf16 %v4400_v26 }
  0x48   : > { %v976_v2 = vrot.slane %v5264_v63, 2  ;;  %v977_v54 = vrot.slane %v5265_v45, 2  ;;  %v979_v17 = vrot.slane %v5266_v22, 2  ;;  %v458_v0 = vsel %vm388_vm1, %v455_v29, %v457_v24 }
  0x49   : > { %3582 = vmatmul.mubr.msk.bf16.vlgmr.msra.gmra.mrb[0].mxu0 %vm519_vm2, %v4565_v37  ;;  %v981_v39 = vrot.slane %v5267_v40, 2  ;;  %v982_v25 = vrot.slane %v5268_v59, 2  ;;  %v984_v63 = vrot.slane %v5269_v3, 2  ;;  %v5256_v22 = vunpack.c.l.bf16 %v4653_v52 }
  0x4a   : > { %3614 = vmatpush3.bf16.msra.mxu0 %v1950_v53  ;;  %3585 = vmatprep.mubr.msk.bf16.mxu0 %vm519_vm2, %v4613_v62  ;;  %v4656_v53 = vld [vmem:[%s4265_s11 + $0xbc] sm:$0x1]  ;;  %v5255_v45 = vunpack.c.h.bf16 %v4653_v52  ;;  %v463_v40 = vsel %vm388_vm1, %v460_v42, %v462_v61  ;;  %v978_v59 = vsel %vm945_vm3, %v976_v2, %v977_v54  ;;  %v4688_v3 = vpack.c.bf16 %v458_v0, %v456_v18 }
  0x4b   : > { %3981 = vmatprep.subr.msk.bf16.mxu0 %vm568_vm0, %v4628_v47  ;;  %v980_v26 = vsel %vm945_vm3, %v977_v54, %v979_v17  ;;  %v983_v29 = vsel %vm945_vm3, %v981_v39, %v982_v25  ;;  %v985_v24 = vsel %vm945_vm3, %v982_v25, %v984_v63  ;;  %v5271_v18 = vunpack.c.l.bf16 %v4656_v53 }
  0x4c   : > { %v4705_v17 = vpack.c.bf16 %v980_v26, %v978_v59  ;;  %v4707_v39 = vpack.c.bf16 %v985_v24, %v983_v29  ;;  %v5272_v54 = vunpack.c.l.bf16 %v4427_v51  ;;  %v5273_v63 = vunpack.c.h.bf16 %v4427_v51 }
  0x4d   : > { %v467_v61 = vrot.slane %v5271_v18, 1  ;;  %v5275_v59 = vunpack.c.l.bf16 %v4452_v30  ;;  %v5276_v29 = vunpack.c.h.bf16 %v4452_v30 }
  0x4e   : > { %3432 = vmatmul.mubr.msk.bf16.gmra.mrb[20].mxu1 %vm519_vm2, %v4621_v12  ;;  %v461_v12 = vsel %vm388_vm1, %v459_v4, %v460_v42  ;;  %v464_v4 = vrot.slane %v5256_v22, 1  ;;  %v465_v42 = vrot.slane %v5255_v45, 1  ;;  %v987_v0 = vrot.slane %v5273_v63, 2 }
  0x4f   : > { %3435 = vmatprep.mubr.msk.bf16.mxu1 %vm519_vm2, %v4640_v5  ;;  %v4695_v20 = vpack.c.bf16 %v463_v40, %v461_v12  ;;  %v986_v12 = vrot.slane %v5272_v54, 2  ;;  %v5274_v40 = vunpack.c.l.bf16 %v4434_v58  ;;  %v991_v26 = vrot.slane %v5275_v59, 2 }
  0x50   : > { %v466_v2 = vsel %vm388_vm1, %v464_v4, %v465_v42  ;;  %v468_v25 = vsel %vm388_vm1, %v465_v42, %v467_v61  ;;  %v992_v24 = vrot.slane %v5276_v29, 2  ;;  %v5277_v54 = vunpack.c.l.bf16 %v4459_v36 }
  0x51   : > { %3586 = vmatmul.mubr.msk.bf16.gmra.mrb[4].mxu0 %vm519_vm2, %v4644_v33  ;;  %5270 = vst [vmem:[#allocation7_spill] sm:$0xff] %v4695_v20  ;;  %v989_v18 = vrot.slane %v5274_v40, 2  ;;  %v5278_v22 = vunpack.c.l.bf16 %v4268_v6  ;;  %v5279_v42 = vunpack.c.h.bf16 %v4268_v6  ;;  %v5280_v63 = vunpack.c.l.bf16 %v4271_v7 }
  0x52   : > { %3589 = vmatprep.mubr.msk.bf16.mxu0 %vm519_vm2, %v4660_v23  ;;  %v994_v45 = vrot.slane %v5277_v54, 2  ;;  %v4733_v58 = vpack.c.bf16 %v468_v25, %v466_v2  ;;  %v988_v36 = vsel %vm945_vm3, %v986_v12, %v987_v0  ;;  %v5281_v2 = vunpack.c.l.bf16 %v4470_v50 }
  0x53   : > { %v946_v4 = vrot.slane %v5278_v22, 2  ;;  %v947_v61 = vrot.slane %v5279_v42, 2  ;;  %v990_v40 = vsel %vm945_vm3, %v987_v0, %v989_v18  ;;  %v993_v22 = vsel %vm945_vm3, %v991_v26, %v992_v24 }
  0x54   : > { %v995_v59 = vsel %vm945_vm3, %v992_v24, %v994_v45  ;;  %v4746_v7 = vpack.c.bf16 %v990_v40, %v988_v36  ;;  %v996_v25 = vrot.slane %v5281_v2, 2  ;;  %v5282_v45 = vunpack.c.h.bf16 %v4470_v50 }
  0x55   : > { %v4742_v29 = vsel %vm945_vm3, %v946_v4, %v947_v61  ;;  %v4755_v12 = vpack.c.bf16 %v995_v59, %v993_v22  ;;  %v5283_v18 = vunpack.c.l.bf16 %v4473_v13  ;;  %v5284_v4 = vunpack.c.l.bf16 %v4508_v31 }
  0x56   : > { %3436 = vmatmul.mubr.msk.bf16.gmra.mrb[24].mxu1 %vm519_vm2, %v4688_v3  ;;  %v997_v0 = vrot.slane %v5282_v45, 2  ;;  %v1125_v40 = vsel %vm568_vm0, %v4336_v44, 0  ;;  %v5287_v44 = vunpack.c.l.bf16 %v4526_v15 }
  0x57   : > { %3439 = vmatprep.mubr.msk.bf16.mxu1 %vm519_vm2, %v4695_v20  ;;  %v949_v20 = vrot.slane %v5280_v63, 2  ;;  %v999_v26 = vrot.slane %v5283_v18, 2  ;;  %v1001_v42 = vrot.slane %v5284_v4, 2  ;;  %v5286_v63 = vunpack.c.l.bf16 %v4511_v32  ;;  %v4782_v32 = vld [vmem:[%s5218_s1 + $0x6] sm:$0x3] }
  0x58   : > { %v998_v13 = vsel %vm945_vm3, %v996_v25, %v997_v0  ;;  %v1006_v45 = vrot.slane %v5287_v44, 2 }
  0x59   : > { %3590 = vmatmul.mubr.msk.bf16.gmra.mrb[8].mxu0 %vm519_vm2, %v4705_v17  ;;  %v4751_v54 = vsel %vm945_vm3, %v947_v61, %v949_v20  ;;  %v5285_v20 = vunpack.c.h.bf16 %v4508_v31  ;;  %v1000_v36 = vsel %vm945_vm3, %v997_v0, %v999_v26  ;;  %v5288_v0 = vunpack.c.h.bf16 %v4526_v15 }
  0x5a   : > { %3593 = vmatprep.mubr.msk.bf16.mxu0 %vm519_vm2, %v4707_v39  ;;  %v1058_v24 = vpack.c.bf16 %v4751_v54, %v4742_v29  ;;  %v4786_v2 = vpack.c.bf16 %v1000_v36, %v998_v13  ;;  %v5289_v26 = vunpack.c.l.bf16 %v4534_v46  ;;  %v268_v54 = vld [vmem:[%s4265_s11 + $0xd4] sm:$0x1] }
  0x5b   : > { %v1002_v61 = vrot.slane %v5285_v20, 2  ;;  %v1007_v18 = vrot.slane %v5288_v0, 2  ;;  %v5294_v0 = vunpack.c.h.bf16 %v4596_v38 }
  0x5c   : > { %v1009_v4 = vrot.slane %v5289_v26, 2 }
  0x5d   : > { %v1003_v22 = vsel %vm945_vm3, %v1001_v42, %v1002_v61  ;;  %v5290_v42 = vunpack.c.l.bf16 %v4577_v11  ;;  %v1008_v46 = vsel %vm945_vm3, %v1006_v45, %v1007_v18  ;;  %v1017_v26 = vrot.slane %v5294_v0, 2 }
  0x5e   : > { %3440 = vmatmul.mubr.msk.bf16.gmra.mrb[28].mxu1 %vm519_vm2, %v4733_v58  ;;  %v1010_v36 = vsel %vm945_vm3, %v1007_v18, %v1009_v4  ;;  %v5295_v18 = vunpack.c.l.bf16 %v4599_v48 }
  0x5f   : > { %3445 = vmatprep.mubr.msk.bf16.mxu1 %vm519_vm2, %v4268_v6  ;;  %v1004_v6 = vrot.slane %v5286_v63, 2  ;;  %v1011_v20 = vrot.slane %v5290_v42, 2  ;;  %v5296_v42 = vunpack.c.l.bf16 %v4653_v52 }
  0x60   : > { %v1019_v4 = vrot.slane %v5295_v18, 2 }
  0x61   : > { %3594 = vmatmul.mubr.msk.bf16.gmra.mrb[12].mxu0 %vm519_vm2, %v4746_v7  ;;  %v1005_v59 = vsel %vm945_vm3, %v1002_v61, %v1004_v6  ;;  %v5291_v61 = vunpack.c.h.bf16 %v4577_v11  ;;  %v5292_v6 = vunpack.c.l.bf16 %v4587_v41 }
  0x62   : > { %3597 = vmatprep.mubr.msk.bf16.mxu0 %vm519_vm2, %v4755_v12  ;;  %v4790_v25 = vpack.c.bf16 %v1005_v59, %v1003_v22  ;;  %v4816_v22 = vpack.c.bf16 %v1010_v36, %v1008_v46  ;;  %v5293_v59 = vunpack.c.l.bf16 %v4596_v38  ;;  %v4835_v46 = vld [vmem:[%s4265_s11 + $0xc0] sm:$0xff]   ;;  %v265_v36 = vld [vmem:[%s4265_s11 + $0xc8] sm:$0x1]  ;;  %v1020_v48 = vsel %vm945_vm3, %v1017_v26, %v1019_v4 }
  0x63   : > { %v1012_v63 = vrot.slane %v5291_v61, 2  ;;  %v1014_v13 = vrot.slane %v5292_v6, 2  ;;  %v5297_v61 = vunpack.c.h.bf16 %v4653_v52  ;;  %v5298_v6 = vunpack.c.l.bf16 %v4656_v53 }
  0x64   : > { %v1016_v44 = vrot.slane %v5293_v59, 2  ;;  %v318_v59 = vunpack.c.h.bf16 %v4835_v46  ;;  %v319_v0 = vunpack.c.l.bf16 %v265_v36 }
  0x65   : > { %v1015_v41 = vsel %vm945_vm3, %v1012_v63, %v1014_v13  ;;  %v1024_v13 = vrot.slane %v5298_v6, 2 }
  0x66   : > { %3446 = vmatmul.mubr.msk.bf16.vlgmr.msra.gmra.mrb[0].mxu1 %vm519_vm2, %v4274_v8  ;;  %v1735_v4 = vrot.slane %v318_v59, 2  ;;  %v1528_v36 = vrot.slane %v319_v0, 1 }
  0x67   : > { %3478 = vmatpush3.bf16.msra.mxu1 %v1125_v40  ;;  %3449 = vmatprep.mubr.msk.bf16.mxu1 %vm519_vm2, %v4284_v14  ;;  %v1013_v40 = vsel %vm945_vm3, %v1011_v20, %v1012_v63  ;;  %v1021_v20 = vrot.slane %v5296_v42, 2  ;;  %v1022_v63 = vrot.slane %v5297_v61, 2  ;;  %v1737_v61 = vrot.slane %v319_v0, 2 }
  0x68   : > { %3976 = vmatprep.subr.msk.bf16.mxu1 %vm568_vm0, %v4782_v32  ;;  %v4824_v45 = vpack.c.bf16 %v1015_v41, %v1013_v40  ;;  %v1018_v40 = vsel %vm945_vm3, %v1016_v44, %v1017_v26  ;;  %v317_v41 = vunpack.c.l.bf16 %v4835_v46  ;;  %v322_v0 = vunpack.c.l.bf16 %v268_v54 }
  0x69   : > { %3598 = vmatmul.mubr.msk.bf16.gmra.mrb[16].mxu0 %vm519_vm2, %v4786_v2  ;;  %v1023_v53 = vsel %vm945_vm3, %v1021_v20, %v1022_v63  ;;  %v1025_v18 = vsel %vm945_vm3, %v1022_v63, %v1024_v13  ;;  %v4850_v42 = vpack.c.bf16 %v1020_v48, %v1018_v40  ;;  %v1526_v20 = vrot.slane %v318_v59, 1  ;;  %v3073_v59 = vld [vmem:[%s5218_s1 + $0x10] sm:$0x3] }
  0x6a   : > { %3601 = vmatprep.mubr.msk.bf16.mxu0 %vm519_vm2, %v4790_v25  ;;  %v4854_v44 = vpack.c.bf16 %v1025_v18, %v1023_v53  ;;  %v1734_v26 = vrot.slane %v317_v41, 2  ;;  %v1525_v6 = vrot.slane %v317_v41, 1  ;;  %v1738_v13 = vsel %vm945_vm3, %v1735_v4, %v1737_v61 }
  0x6b   : > { %v1529_v48 = vsel %vm388_vm1, %v1526_v20, %v1528_v36  ;;  %v2162_v41 = vsel %vm568_vm0, %v4628_v47, 0  ;;  %v1327_v47 = vsel %vm568_vm0, %v4782_v32, 0 }
  0x6c   : > { %v1736_v63 = vsel %vm945_vm3, %v1734_v26, %v1735_v4  ;;  %v1527_v40 = vsel %vm388_vm1, %v1525_v6, %v1526_v20  ;;  %v2360_v26 = vrot.slane %v322_v0, 2  ;;  %v2371_v20 = vsel %vm568_vm0, %v3073_v59, 0 }
  0x6d   : > { %v4864_v53 = vpack.c.bf16 %v1529_v48, %v1527_v40  ;;  %v4868_v18 = vpack.c.bf16 %v1738_v13, %v1736_v63 }
  0x6e   : > { %3450 = vmatmul.mubr.msk.bf16.gmra.mrb[4].mxu1 %vm519_vm2, %v4307_v27 }
  0x6f   : > { %3453 = vmatprep.mubr.msk.bf16.mxu1 %vm519_vm2, %v4319_v35 }
  0x71   : > { %3602 = vmatmul.mubr.msk.bf16.gmra.mrb[20].mxu0 %vm519_vm2, %v4816_v22 }
  0x72   : > { %3605 = vmatprep.mubr.msk.bf16.mxu0 %vm519_vm2, %v4824_v45 }
  0x76   : > { %3454 = vmatmul.mubr.msk.bf16.gmra.mrb[8].mxu1 %vm519_vm2, %v4347_v49 }
  0x77   : > { %3457 = vmatprep.mubr.msk.bf16.mxu1 %vm519_vm2, %v4357_v55 }
  0x79   : > { %3606 = vmatmul.mubr.msk.bf16.gmra.mrb[24].mxu0 %vm519_vm2, %v4850_v42 }
  0x7a   : > { %3609 = vmatprep.mubr.msk.bf16.mxu0 %vm519_vm2, %v4854_v44 }
  0x7e   : > { %3458 = vmatmul.mubr.msk.bf16.gmra.mrb[12].mxu1 %vm519_vm2, %v4391_v19 }
  0x7f   : > { %3461 = vmatprep.mubr.msk.bf16.mxu1 %vm519_vm2, %v4427_v51 }
  0x81   : > { %3610 = vmatmul.mubr.msk.bf16.gmra.mrb[28].mxu0 %vm519_vm2, %v4868_v18 }
  0x82   : > { %3615 = vmatprep.mubr.msk.bf16.mxu0 %vm519_vm2, %v4284_v14 }
  0x86   : > { %3462 = vmatmul.mubr.msk.bf16.gmra.mrb[16].mxu1 %vm519_vm2, %v4452_v30 }
  0x87   : > { %3465 = vmatprep.mubr.msk.bf16.mxu1 %vm519_vm2, %v4470_v50 }
  0x89   : > { %3616 = vmatmul.mubr.msk.bf16.vlgmr.msra.gmra.mrb[0].mxu0 %vm519_vm2, %v4307_v27 }
  0x8a   : > { %3648 = vmatpush3.bf16.msra.mxu0 %v2162_v41  ;;  %3619 = vmatprep.mubr.msk.bf16.mxu0 %vm519_vm2, %v4319_v35 }
  0x8b   : > { %3982 = vmatprep.subr.msk.bf16.mxu0 %vm568_vm0, %v3073_v59 }
  0x8e   : > { %3466 = vmatmul.mubr.msk.bf16.gmra.mrb[20].mxu1 %vm519_vm2, %v4508_v31 }
  0x8f   : > { %3469 = vmatprep.mubr.msk.bf16.mxu1 %vm519_vm2, %v4526_v15 }
  0x91   : > { %3620 = vmatmul.mubr.msk.bf16.gmra.mrb[4].mxu0 %vm519_vm2, %v4347_v49 }
  0x92   : > { %3623 = vmatprep.mubr.msk.bf16.mxu0 %vm519_vm2, %v4357_v55 }
  0x96   : > { %3470 = vmatmul.mubr.msk.bf16.gmra.mrb[24].mxu1 %vm519_vm2, %v4577_v11 }
  0x97   : > { %3473 = vmatprep.mubr.msk.bf16.mxu1 %vm519_vm2, %v4596_v38 }
  0x99   : > { %3624 = vmatmul.mubr.msk.bf16.gmra.mrb[8].mxu0 %vm519_vm2, %v4391_v19 }
  0x9a   : > { %3627 = vmatprep.mubr.msk.bf16.mxu0 %vm519_vm2, %v4427_v51 }
  0x9e   : > { %3474 = vmatmul.mubr.msk.bf16.gmra.mrb[28].mxu1 %vm519_vm2, %v4653_v52 }
  0x9f   : > { %3479 = vmatprep.mubr.msk.bf16.mxu1 %vm519_vm2, %v1058_v24 }
  0xa1   : > { %3628 = vmatmul.mubr.msk.bf16.gmra.mrb[12].mxu0 %vm519_vm2, %v4452_v30 }
  0xa2   : > { %3631 = vmatprep.mubr.msk.bf16.mxu0 %vm519_vm2, %v4470_v50 }
  0xa6   : > { %3480 = vmatmul.mubr.msk.bf16.vlgmr.msra.gmra.mrb[0].mxu1 %vm519_vm2, %v4517_v9 }
  0xa7   : > { %3512 = vmatpush3.bf16.msra.mxu1 %v1327_v47  ;;  %3483 = vmatprep.mubr.msk.bf16.mxu1 %vm519_vm2, %v4565_v37 }
  0xa8   : > { %3978 = vmatprep.subr.msk.bf16.mxu1 %vm568_vm0, %v4241_v1  ;;  %v266_v1 = vld [vmem:[%s4265_s11 + $0xcc] sm:$0xff]   ;;  %s2812_s11 = sshll.u32 %s5110_s9, 4  ;;  %s5165_s11 = int_to_ptr.vmem [resolvable:$true] %s2812_s11 }
  0xa9   : > { %3632 = vmatmul.mubr.msk.bf16.gmra.mrb[16].mxu0 %vm519_vm2, %v4508_v31  ;;  %v320_v9 = vunpack.c.l.bf16 %v266_v1  ;;  %v321_v29 = vunpack.c.h.bf16 %v266_v1  ;;  %s4077_s23 = scalar_lea.vmem %s5165_s11, 2048  ;;  %p4084_p1 = scmp.lt.s32.totalorder %s5165_s11, %s4082_s27 }
  0xaa   : > { %3635 = vmatprep.mubr.msk.bf16.mxu0 %vm519_vm2, %v4526_v15  ;;  %p4078_p12 = scmp.ne.s32.totalorder %s5165_s11, %s4077_s23  ;;  %p4085_p2 = scmp.lt.s32.totalorder %s4083_s28, %s4077_s23 }
  0xab   : > { %v2357_v24 = vrot.slane %v320_v9, 2  ;;  %v2358_v32 = vrot.slane %v321_v29, 2 }
  0xac   : > { %p4079_p13 = pnand %p4078_p12, %p4220_p4  ;;  %p4086_p3 = por %p4085_p2, %p4084_p1 }
  0xad   : > { %v4949_v4 = vsel %vm945_vm3, %v2357_v24, %v2358_v32  ;;  %v4954_v61 = vsel %vm945_vm3, %v2358_v32, %v2360_v26 }
  0xae   : > { %3484 = vmatmul.mubr.msk.bf16.gmra.mrb[4].mxu1 %vm519_vm2, %v4613_v62  ;;  %v2364_v6 = vpack.c.bf16 %v4954_v61, %v4949_v4  ;;  %p4080_p0 = pneg %p4079_p13 }
  0xaf   : > { %3487 = vmatprep.mubr.msk.bf16.mxu1 %vm519_vm2, %v4644_v33 }
  0xb0   : > { %p4087_p5 = pnand %p4086_p3, %p4080_p0 }
  0xb1   : > { %3636 = vmatmul.mubr.msk.bf16.gmra.mrb[20].mxu0 %vm519_vm2, %v4577_v11 }
  0xb2   : > { %3639 = vmatprep.mubr.msk.bf16.mxu0 %vm519_vm2, %v4596_v38 }
  0xb6   : > { %3488 = vmatmul.mubr.msk.bf16.gmra.mrb[8].mxu1 %vm519_vm2, %v4660_v23 }
  0xb7   : > { %3491 = vmatprep.mubr.msk.bf16.mxu1 %vm519_vm2, %v4705_v17 }
  0xb9   : > { %3640 = vmatmul.mubr.msk.bf16.gmra.mrb[24].mxu0 %vm519_vm2, %v4653_v52 }
  0xba   : > { %3643 = vmatprep.mubr.msk.bf16.mxu0 %vm519_vm2, %v4835_v46 }
  0xbe   : > { %3492 = vmatmul.mubr.msk.bf16.gmra.mrb[12].mxu1 %vm519_vm2, %v4707_v39 }
  0xbf   : > { %3495 = vmatprep.mubr.msk.bf16.mxu1 %vm519_vm2, %v4746_v7 }
  0xc1   : > { %3644 = vmatmul.mubr.msk.bf16.gmra.mrb[28].mxu0 %vm519_vm2, %v266_v1 }
  0xc2   : > { %3649 = vmatprep.mubr.msk.bf16.mxu0 %vm519_vm2, %v4359_v56  ;;  %v5300_v56 = vld [vmem:[#allocation6_spill] sm:$0xff] }
  0xc6   : > { %3496 = vmatmul.mubr.msk.bf16.gmra.mrb[16].mxu1 %vm519_vm2, %v4755_v12 }
  0xc7   : > { %3499 = vmatprep.mubr.msk.bf16.mxu1 %vm519_vm2, %v4786_v2 }
  0xc9   : > { %3650 = vmatmul.mubr.msk.bf16.vlgmr.msra.gmra.mrb[0].mxu0 %vm519_vm2, %v4393_v21  ;;  %v2151_v21 = vrot.slane %v322_v0, 1 }
  0xca   : > { %3682 = vmatpush3.bf16.msra.mxu0 %v2371_v20  ;;  %3653 = vmatprep.mubr.msk.bf16.mxu0 %vm519_vm2, %v4402_v28 }
  0xce   : > { %3500 = vmatmul.mubr.msk.bf16.gmra.mrb[20].mxu1 %vm519_vm2, %v4790_v25 }
  0xcf   : > { %3503 = vmatprep.mubr.msk.bf16.mxu1 %vm519_vm2, %v4816_v22 }
  0xd1   : > { %3654 = vmatmul.mubr.msk.bf16.gmra.mrb[4].mxu0 %vm519_vm2, %v4431_v57 }
  0xd2   : > { %3657 = vmatprep.mubr.msk.bf16.mxu0 %vm519_vm2, %v4465_v10  ;;  %v5299_v10 = vld [vmem:[#allocation5_spill] sm:$0xff] }
  0xd6   : > { %3504 = vmatmul.mubr.msk.bf16.gmra.mrb[24].mxu1 %vm519_vm2, %v4824_v45 }
  0xd7   : > { %3507 = vmatprep.mubr.msk.bf16.mxu1 %vm519_vm2, %v4850_v42 }
  0xd9   : > { %3658 = vmatmul.mubr.msk.bf16.gmra.mrb[8].mxu0 %vm519_vm2, %v4485_v60 }
  0xda   : > { %3661 = vmatprep.mubr.msk.bf16.mxu0 %vm519_vm2, %v4528_v16 }
  0xde   : > { %3508 = vmatmul.mubr.msk.bf16.gmra.mrb[28].mxu1 %vm519_vm2, %v4854_v44 }
  0xdf   : > { %3513 = vmatprep.mubr.msk.bf16.mxu1 %vm519_vm2, %v4274_v8  ;;  %v5301_v8 = vld [vmem:[#allocation7_spill] sm:$0xff] }
  0xe1   : > { %3662 = vmatmul.mubr.msk.bf16.gmra.mrb[12].mxu0 %vm519_vm2, %v4563_v43 }
  0xe2   : > { %3665 = vmatprep.mubr.msk.bf16.mxu0 %vm519_vm2, %v4569_v34 }
  0xe6   : > { %3514 = vmatmul.mubr.msk.bf16.vlgmr.msra.gmra.mrb[0].mxu1 %vm519_vm2, %v4284_v14  ;;  %v2148_v14 = vrot.slane %v320_v9, 1 }
  0xe7   : > { %3716 = vmatpush3.bf16.msra.mxu1 %v5299_v10  ;;  %3517 = vmatprep.mubr.msk.bf16.mxu1 %vm519_vm2, %v4307_v27  ;;  %v2149_v27 = vrot.slane %v321_v29, 1 }
  0xe9   : > { %3666 = vmatmul.mubr.msk.bf16.gmra.mrb[16].mxu0 %vm519_vm2, %v5300_v56 }
  0xea   : > { %3669 = vmatprep.mubr.msk.bf16.mxu0 %vm519_vm2, %v4640_v5 }
  0xee   : > { %3518 = vmatmul.mubr.msk.bf16.gmra.mrb[4].mxu1 %vm519_vm2, %v4319_v35  ;;  %v2150_v35 = vsel %vm388_vm1, %v2148_v14, %v2149_v27 }
  0xef   : > { %3521 = vmatprep.mubr.msk.bf16.mxu1 %vm519_vm2, %v4347_v49  ;;  %v2152_v49 = vsel %vm388_vm1, %v2149_v27, %v2151_v21 }
  0xf1   : > { %3670 = vmatmul.mubr.msk.bf16.gmra.mrb[20].mxu0 %vm519_vm2, %v4688_v3 }
  0xf2   : > { %3673 = vmatprep.mubr.msk.bf16.mxu0 %vm519_vm2, %v5301_v8 }
  0xf6   : > { %3522 = vmatmul.mubr.msk.bf16.gmra.mrb[8].mxu1 %vm519_vm2, %v4357_v55  ;;  %v2155_v55 = vpack.c.bf16 %v2152_v49, %v2150_v35 }
  0xf7   : > { %3525 = vmatprep.mubr.msk.bf16.mxu1 %vm519_vm2, %v4391_v19 }
  0xf9   : > { %3674 = vmatmul.mubr.msk.bf16.gmra.mrb[24].mxu0 %vm519_vm2, %v4733_v58 }
  0xfa   : > { %3677 = vmatprep.mubr.msk.bf16.mxu0 %vm519_vm2, %v4864_v53 }
  0xfe   : > { %3526 = vmatmul.mubr.msk.bf16.gmra.mrb[12].mxu1 %vm519_vm2, %v4427_v51 }
  0xff   : > { %3529 = vmatprep.mubr.msk.bf16.mxu1 %vm519_vm2, %v4452_v30 }
 0x101   : > { %3678 = vmatmul.mubr.msk.bf16.gmra.mrb[28].mxu0 %vm519_vm2, %v2155_v55 }
 0x102   : > { %3683 = vmatprep.mubr.msk.bf16.mxu0 %vm519_vm2, %v4565_v37 }
 0x106   : > { %3530 = vmatmul.mubr.msk.bf16.gmra.mrb[16].mxu1 %vm519_vm2, %v4470_v50 }
 0x107   : > { %3533 = vmatprep.mubr.msk.bf16.mxu1 %vm519_vm2, %v4508_v31 }
 0x109   : > { %3684 = vmatmul.mubr.msk.bf16.vlgmr.msra.gmra.mrb[0].mxu0 %vm519_vm2, %v4613_v62 }
 0x10a   : > { %3687 = vmatprep.mubr.msk.bf16.mxu0 %vm519_vm2, %v4644_v33  ;;  %v5101_v33 = vld [vmem:[%s5219_s2] ss:$0 sm:$0xff] }
 0x10e   : > { %3534 = vmatmul.mubr.msk.bf16.gmra.mrb[20].mxu1 %vm519_vm2, %v4526_v15 }
 0x10f   : > { %3537 = vmatprep.mubr.msk.bf16.mxu1 %vm519_vm2, %v4577_v11 }
 0x111   : > { %3688 = vmatmul.mubr.msk.bf16.gmra.mrb[4].mxu0 %vm519_vm2, %v4660_v23 }
 0x112   : > { %3691 = vmatprep.mubr.msk.bf16.mxu0 %vm519_vm2, %v4705_v17 }
 0x116   : > { %3538 = vmatmul.mubr.msk.bf16.gmra.mrb[24].mxu1 %vm519_vm2, %v4596_v38 }
 0x117   : > { %3541 = vmatprep.mubr.msk.bf16.mxu1 %vm519_vm2, %v4653_v52 }
 0x119   : > { %3692 = vmatmul.mubr.msk.bf16.gmra.mrb[8].mxu0 %vm519_vm2, %v4707_v39 }
 0x11a   : > { %3695 = vmatprep.mubr.msk.bf16.mxu0 %vm519_vm2, %v4746_v7 }
 0x11e   : > { %3542 = vmatmul.mubr.msk.bf16.gmra.mrb[28].mxu1 %vm519_vm2, %v4835_v46 }
 0x11f   : > { %3563 = vmatprep.mubr.msk.bf16.mxu1 %vm519_vm2, %v4563_v43 }
 0x121   : > { %3696 = vmatmul.mubr.msk.bf16.gmra.mrb[12].mxu0 %vm519_vm2, %v4755_v12 }
 0x122   : > { %3699 = vmatprep.mubr.msk.bf16.mxu0 %vm519_vm2, %v4786_v2 }
 0x126   : > { %3564 = vmatmul.mubr.msk.bf16.vlgmr.msra.gmra.mrb[16].mxu1 %vm519_vm2, %v4569_v34 }
 0x127   : > { %3567 = vmatprep.mubr.msk.bf16.mxu1 %vm519_vm2, %v5300_v56 }
 0x129   : > { %3700 = vmatmul.mubr.msk.bf16.gmra.mrb[16].mxu0 %vm519_vm2, %v4790_v25 }
 0x12a   : > { %3703 = vmatprep.mubr.msk.bf16.mxu0 %vm519_vm2, %v4816_v22 }
 0x12e   : > { %3568 = vmatmul.mubr.msk.bf16.gmra.mrb[20].mxu1 %vm519_vm2, %v4640_v5 }
 0x12f   : > { %3571 = vmatprep.mubr.msk.bf16.mxu1 %vm519_vm2, %v4688_v3 }
 0x131   : > { %3704 = vmatmul.mubr.msk.bf16.gmra.mrb[20].mxu0 %vm519_vm2, %v4824_v45 }
 0x132   : > { %3707 = vmatprep.mubr.msk.bf16.mxu0 %vm519_vm2, %v4850_v42 }
 0x136   : > { %3572 = vmatmul.mubr.msk.bf16.gmra.mrb[24].mxu1 %vm519_vm2, %v5301_v8 }
 0x137   : > { %3575 = vmatprep.mubr.msk.bf16.mxu1 %vm519_vm2, %v4733_v58 }
 0x139   : > { %3708 = vmatmul.mubr.msk.bf16.gmra.mrb[24].mxu0 %vm519_vm2, %v4854_v44 }
 0x13a   : > { %3711 = vmatprep.mubr.msk.bf16.mxu0 %vm519_vm2, %v4868_v18 }
 0x13e   : > { %3576 = vmatmul.mubr.msk.bf16.gmra.mrb[28].mxu1 %vm519_vm2, %v4864_v53 }
 0x141   : > { %3712 = vmatmul.mubr.msk.bf16.gmra.mrb[28].mxu0 %vm519_vm2, %v2364_v6 }
 0x1b9   : > { %v3515_v19 = vpop.f32.mrb[0].mxu1 }
 0x1ba   : > { %v1363_v28 = vpop.f32.mrb[1].mxu1 }
 0x1bb   : > { %v3516_v50 = vpop.f32.mrb[2].mxu1 }
 0x1bc   : > { %v1366_v51 = vpop.f32.mrb[3].mxu1 }
 0x1c1   : > { %v3519_v57 = vpop.f32.mrb[4].mxu1 }
 0x1c2   : > { %v1379_v30 = vpop.f32.mrb[5].mxu1 }
 0x1c3   : > { %v3520_v16 = vpop.f32.mrb[6].mxu1 }
 0x1c4   : > { %v1382_v60 = vpop.f32.mrb[7].mxu1 }
 0x1c9   : > { %v3523_v31 = vpop.f32.mrb[8].mxu1 }
 0x1ca   : > { %v1395_v15 = vpop.f32.mrb[9].mxu1 }
 0x1cb   : > { %v3524_v11 = vpop.f32.mrb[10].mxu1 }
 0x1cc   : > { %v1398_v43 = vpop.f32.mrb[11].mxu1 }
 0x1d1   : > { %v5090_v37 = vpop.f32.mrb[12].mxu1 }
 0x1d2   : > { %v5092_v34 = vpop.f32.mrb[13].mxu1 }
 0x1d3   : > { %v5094_v38 = vpop.f32.mrb[14].mxu1 }
 0x1d4   : > { %v5096_v62 = vpop.f32.mrb[15].mxu1 }
 0x1dc   : > { %v3685_v5 = vpop.f32.mrb[0].mxu0 }
 0x1dd   : > { %v3717_v52 = vadd.f32 %v3685_v5, %v3515_v19  ;;  %v2407_v23 = vpop.f32.mrb[1].mxu0 }
 0x1de   : > { %v3718_v3 = vadd.f32 %v2407_v23, %v1363_v28  ;;  %v3686_v17 = vpop.f32.mrb[2].mxu0 }
 0x1df   : > { %v2575_v39 = vadd.f32 %v3717_v52, %v5101_v33  ;;  %v3719_v58 = vadd.f32 %v3686_v17, %v3516_v50  ;;  %v2410_v7 = vpop.f32.mrb[3].mxu0 }
 0x1e0   : > { %v2573_v12 = vadd.f32 %v3718_v3, %v5101_v33  ;;  %v3720_v2 = vadd.f32 %v2410_v7, %v1366_v51 }
 0x1e1   : > { %v2576_v25 = vadd.f32 %v3719_v58, %v5101_v33  ;;  %v2607_v45 = vmax.f32 %v2575_v39, 0.0 }
 0x1e2   : > { %v2574_v22 = vadd.f32 %v3720_v2, %v5101_v33  ;;  %v2605_v42 = vmax.f32 %v2573_v12, 0.0 }
 0x1e3   : > { %v2608_v46 = vmax.f32 %v2576_v25, 0.0 }
 0x1e4   : > { %v2606_v44 = vmax.f32 %v2574_v22, 0.0  ;;  %v3689_v36 = vpop.f32.mrb[4].mxu0 }
 0x1e5   : > { %v3169_v63 = vpack.c.bf16 %v2608_v46, %v2607_v45  ;;  %v3721_v13 = vadd.f32 %v3689_v36, %v3519_v57  ;;  %v2423_v40 = vpop.f32.mrb[5].mxu0 }
 0x1e6   : > { %v3164_v48 = vpack.c.bf16 %v2606_v44, %v2605_v42  ;;  %v3722_v53 = vadd.f32 %v2423_v40, %v1379_v30  ;;  %v3690_v18 = vpop.f32.mrb[6].mxu0 }
 0x1e7   : > { %3241 = vst [vmem:[%s5110_s9 + $0x8] sm:$0xff] %v3169_v63   ;;  %v2579_v41 = vadd.f32 %v3721_v13, %v5101_v33  ;;  %v3723_v59 = vadd.f32 %v3690_v18, %v3520_v16  ;;  %v2426_v47 = vpop.f32.mrb[7].mxu0 }
 0x1e8   : > { %3165 = vst [vmem:[%s5110_s9] sm:$0xff] %v3164_v48   ;;  %v2577_v1 = vadd.f32 %v3722_v53, %v5101_v33  ;;  %v3724_v9 = vadd.f32 %v2426_v47, %v1382_v60 }
 0x1e9   : > { %v2580_v29 = vadd.f32 %v3723_v59, %v5101_v33  ;;  %v2611_v24 = vmax.f32 %v2579_v41, 0.0 }
 0x1ea   : > { %v2578_v54 = vadd.f32 %v3724_v9, %v5101_v33  ;;  %v2609_v0 = vmax.f32 %v2577_v1, 0.0 }
 0x1eb   : > { %v2612_v32 = vmax.f32 %v2580_v29, 0.0 }
 0x1ec   : > { %v2610_v26 = vmax.f32 %v2578_v54, 0.0  ;;  %v3693_v4 = vpop.f32.mrb[8].mxu0 }
 0x1ed   : > { %v3179_v61 = vpack.c.bf16 %v2612_v32, %v2611_v24  ;;  %v3725_v6 = vadd.f32 %v3693_v4, %v3523_v31  ;;  %v2439_v20 = vpop.f32.mrb[9].mxu0 }
 0x1ee   : > { %v3174_v10 = vpack.c.bf16 %v2610_v26, %v2609_v0  ;;  %v3726_v56 = vadd.f32 %v2439_v20, %v1395_v15  ;;  %v3694_v8 = vpop.f32.mrb[10].mxu0 }
 0x1ef   : > { %3243 = vst [vmem:[%s5110_s9 + $0x18] sm:$0xff] %v3179_v61   ;;  %v2583_v14 = vadd.f32 %v3725_v6, %v5101_v33  ;;  %v3727_v27 = vadd.f32 %v3694_v8, %v3524_v11  ;;  %v2442_v21 = vpop.f32.mrb[11].mxu0 }
 0x1f0   : > { %3242 = vst [vmem:[%s5110_s9 + $0x10] sm:$0xff] %v3174_v10   ;;  %v2581_v35 = vadd.f32 %v3726_v56, %v5101_v33  ;;  %v3728_v49 = vadd.f32 %v2442_v21, %v1398_v43 }
 0x1f1   : > { %v2584_v55 = vadd.f32 %v3727_v27, %v5101_v33  ;;  %v2615_v28 = vmax.f32 %v2583_v14, 0.0 }
 0x1f2   : > { %v2582_v19 = vadd.f32 %v3728_v49, %v5101_v33  ;;  %v2613_v51 = vmax.f32 %v2581_v35, 0.0 }
 0x1f3   : > { %v2616_v50 = vmax.f32 %v2584_v55, 0.0 }
 0x1f4   : > { %v2614_v57 = vmax.f32 %v2582_v19, 0.0  ;;  %v3697_v30 = vpop.f32.mrb[12].mxu0 }
 0x1f5   : > { %v3189_v16 = vpack.c.bf16 %v2616_v50, %v2615_v28  ;;  %v3729_v60 = vadd.f32 %v3697_v30, %v5090_v37  ;;  %v2455_v31 = vpop.f32.mrb[13].mxu0 }
 0x1f6   : > { %v3184_v15 = vpack.c.bf16 %v2614_v57, %v2613_v51  ;;  %v3730_v11 = vadd.f32 %v2455_v31, %v5092_v34  ;;  %v3698_v5 = vpop.f32.mrb[14].mxu0 }
 0x1f7   : > { %3245 = vst [vmem:[%s5110_s9 + $0x28] sm:$0xff] %v3189_v16   ;;  %v2587_v43 = vadd.f32 %v3729_v60, %v5101_v33  ;;  %v3731_v52 = vadd.f32 %v3698_v5, %v5094_v38  ;;  %v2458_v23 = vpop.f32.mrb[15].mxu0 }
 0x1f8   : > { %3244 = vst [vmem:[%s5110_s9 + $0x20] sm:$0xff] %v3184_v15   ;;  %v2585_v3 = vadd.f32 %v3730_v11, %v5101_v33  ;;  %v3732_v17 = vadd.f32 %v2458_v23, %v5096_v62 }
 0x1f9   : > { %v3565_v39 = vpop.f32.mrb[16].mxu1  ;;  %v2588_v58 = vadd.f32 %v3731_v52, %v5101_v33  ;;  %v2619_v12 = vmax.f32 %v2587_v43, 0.0 }
 0x1fa   : > { %v1639_v37 = vpop.f32.mrb[17].mxu1  ;;  %v2586_v7 = vadd.f32 %v3732_v17, %v5101_v33  ;;  %v2617_v22 = vmax.f32 %v2585_v3, 0.0 }
 0x1fb   : > { %v3566_v34 = vpop.f32.mrb[18].mxu1  ;;  %v2620_v2 = vmax.f32 %v2588_v58, 0.0 }
 0x1fc   : > { %v1642_v25 = vpop.f32.mrb[19].mxu1  ;;  %v2618_v38 = vmax.f32 %v2586_v7, 0.0  ;;  %v3701_v45 = vpop.f32.mrb[16].mxu0 }
 0x1fd   : > { %v3199_v46 = vpack.c.bf16 %v2620_v2, %v2619_v12  ;;  %v3733_v42 = vadd.f32 %v3701_v45, %v3565_v39  ;;  %v2471_v44 = vpop.f32.mrb[17].mxu0 }
 0x1fe   : > { %v3194_v36 = vpack.c.bf16 %v2618_v38, %v2617_v22  ;;  %v3734_v62 = vadd.f32 %v2471_v44, %v1639_v37  ;;  %v3702_v63 = vpop.f32.mrb[18].mxu0 }
 0x1ff   : > { %3247 = vst [vmem:[%s5110_s9 + $0x38] sm:$0xff] %v3199_v46   ;;  %v2591_v13 = vadd.f32 %v3733_v42, %v5101_v33  ;;  %v3735_v40 = vadd.f32 %v3702_v63, %v3566_v34  ;;  %v2474_v48 = vpop.f32.mrb[19].mxu0 }
 0x200   : > { %3246 = vst [vmem:[%s5110_s9 + $0x30] sm:$0xff] %v3194_v36   ;;  %v2589_v53 = vadd.f32 %v3734_v62, %v5101_v33  ;;  %v3736_v18 = vadd.f32 %v2474_v48, %v1642_v25 }
 0x201   : > { %v3569_v41 = vpop.f32.mrb[20].mxu1  ;;  %v2592_v59 = vadd.f32 %v3735_v40, %v5101_v33  ;;  %v2623_v29 = vmax.f32 %v2591_v13, 0.0 }
 0x202   : > { %v1655_v47 = vpop.f32.mrb[21].mxu1  ;;  %v2590_v1 = vadd.f32 %v3736_v18, %v5101_v33  ;;  %v2621_v32 = vmax.f32 %v2589_v53, 0.0 }
 0x203   : > { %v3570_v9 = vpop.f32.mrb[22].mxu1  ;;  %v2624_v54 = vmax.f32 %v2592_v59, 0.0 }
 0x204   : > { %v1658_v24 = vpop.f32.mrb[23].mxu1  ;;  %v2622_v0 = vmax.f32 %v2590_v1, 0.0  ;;  %v3705_v26 = vpop.f32.mrb[20].mxu0 }
 0x205   : > { %v3209_v4 = vpack.c.bf16 %v2624_v54, %v2623_v29  ;;  %v3737_v61 = vadd.f32 %v3705_v26, %v3569_v41  ;;  %v2487_v6 = vpop.f32.mrb[21].mxu0 }
 0x206   : > { %v3204_v20 = vpack.c.bf16 %v2622_v0, %v2621_v32  ;;  %v3738_v10 = vadd.f32 %v2487_v6, %v1655_v47  ;;  %v3706_v56 = vpop.f32.mrb[22].mxu0 }
 0x207   : > { %3249 = vst [vmem:[%s5110_s9 + $0x48] sm:$0xff] %v3209_v4   ;;  %v2595_v8 = vadd.f32 %v3737_v61, %v5101_v33  ;;  %v3739_v14 = vadd.f32 %v3706_v56, %v3570_v9  ;;  %v2490_v27 = vpop.f32.mrb[23].mxu0 }
 0x208   : > { %3248 = vst [vmem:[%s5110_s9 + $0x40] sm:$0xff] %v3204_v20   ;;  %v2593_v21 = vadd.f32 %v3738_v10, %v5101_v33  ;;  %v3740_v35 = vadd.f32 %v2490_v27, %v1658_v24 }
 0x209   : > { %v3573_v49 = vpop.f32.mrb[24].mxu1  ;;  %v2596_v55 = vadd.f32 %v3739_v14, %v5101_v33  ;;  %v2627_v51 = vmax.f32 %v2595_v8, 0.0 }
 0x20a   : > { %v1671_v19 = vpop.f32.mrb[25].mxu1  ;;  %v2594_v28 = vadd.f32 %v3740_v35, %v5101_v33  ;;  %v2625_v16 = vmax.f32 %v2593_v21, 0.0 }
 0x20b   : > { %v3574_v50 = vpop.f32.mrb[26].mxu1  ;;  %v2628_v57 = vmax.f32 %v2596_v55, 0.0 }
 0x20c   : > { %v1674_v30 = vpop.f32.mrb[27].mxu1  ;;  %v2626_v60 = vmax.f32 %v2594_v28, 0.0  ;;  %v3709_v31 = vpop.f32.mrb[24].mxu0 }
 0x20d   : > { %v3219_v15 = vpack.c.bf16 %v2628_v57, %v2627_v51  ;;  %v3741_v11 = vadd.f32 %v3709_v31, %v3573_v49  ;;  %v2503_v5 = vpop.f32.mrb[25].mxu0 }
 0x20e   : > { %v3214_v43 = vpack.c.bf16 %v2626_v60, %v2625_v16  ;;  %v3742_v52 = vadd.f32 %v2503_v5, %v1671_v19  ;;  %v3710_v23 = vpop.f32.mrb[26].mxu0 }
 0x20f   : > { %3251 = vst [vmem:[%s5110_s9 + $0x58] sm:$0xff] %v3219_v15   ;;  %v2599_v3 = vadd.f32 %v3741_v11, %v5101_v33  ;;  %v3743_v17 = vadd.f32 %v3710_v23, %v3574_v50  ;;  %v2506_v39 = vpop.f32.mrb[27].mxu0 }
 0x210   : > { %3250 = vst [vmem:[%s5110_s9 + $0x50] sm:$0xff] %v3214_v43   ;;  %v2597_v58 = vadd.f32 %v3742_v52, %v5101_v33  ;;  %v3744_v37 = vadd.f32 %v2506_v39, %v1674_v30 }
 0x211   : > { %v3577_v7 = vpop.f32.mrb[28].mxu1  ;;  %v2600_v34 = vadd.f32 %v3743_v17, %v5101_v33  ;;  %v2631_v22 = vmax.f32 %v2599_v3, 0.0 }
 0x212   : > { %v1687_v12 = vpop.f32.mrb[29].mxu1  ;;  %v2598_v2 = vadd.f32 %v3744_v37, %v5101_v33  ;;  %v2629_v46 = vmax.f32 %v2597_v58, 0.0 }
 0x213   : > { %v3578_v25 = vpop.f32.mrb[30].mxu1  ;;  %v2632_v38 = vmax.f32 %v2600_v34, 0.0 }
 0x214   : > { %v1690_v45 = vpop.f32.mrb[31].mxu1  ;;  %v2630_v42 = vmax.f32 %v2598_v2, 0.0  ;;  %v3713_v44 = vpop.f32.mrb[28].mxu0 }
 0x215   : > { %v3229_v36 = vpack.c.bf16 %v2632_v38, %v2631_v22  ;;  %v3745_v62 = vadd.f32 %v3713_v44, %v3577_v7  ;;  %v2519_v63 = vpop.f32.mrb[29].mxu0 }
 0x216   : > { %v3224_v13 = vpack.c.bf16 %v2630_v42, %v2629_v46  ;;  %v3746_v40 = vadd.f32 %v2519_v63, %v1687_v12  ;;  %v3714_v48 = vpop.f32.mrb[30].mxu0 }
 0x217   : > { %3253 = vst [vmem:[%s5110_s9 + $0x68] sm:$0xff] %v3229_v36   ;;  %v2603_v53 = vadd.f32 %v3745_v62, %v5101_v33  ;;  %v3747_v18 = vadd.f32 %v3714_v48, %v3578_v25  ;;  %v2522_v41 = vpop.f32.mrb[31].mxu0 }
 0x218   : > { %3252 = vst [vmem:[%s5110_s9 + $0x60] sm:$0xff] %v3224_v13   ;;  %v2601_v59 = vadd.f32 %v3746_v40, %v5101_v33  ;;  %v3748_v47 = vadd.f32 %v2522_v41, %v1690_v45 }
 0x219   : > { %v2604_v1 = vadd.f32 %v3747_v18, %v5101_v33  ;;  %v2635_v29 = vmax.f32 %v2603_v53, 0.0 }
 0x21a   : > { %v2602_v9 = vadd.f32 %v3748_v47, %v5101_v33  ;;  %v2633_v24 = vmax.f32 %v2601_v59, 0.0 }
 0x21b   : > { %v2636_v54 = vmax.f32 %v2604_v1, 0.0 }
 0x21c   : > { %v2634_v32 = vmax.f32 %v2602_v9, 0.0 }
 0x21d   : > { %v3239_v0 = vpack.c.bf16 %v2636_v54, %v2635_v29 }
 0x21e   : > { %v3234_v26 = vpack.c.bf16 %v2634_v32, %v2633_v24 }
 0x21f   : > { %3255 = vst [vmem:[%s5110_s9 + $0x78] sm:$0xff] %v3239_v0  }
 0x220   : > { %3254 = vst [vmem:[%s5110_s9 + $0x70] sm:$0xff] %v3234_v26  }
 0x221   : > { %4090 = shalt.err (!%p4087_p5)
}
 0x222   : > { %s4091_s29 = scalar_lea.hbm %s5163_s21, 2048  ;;  %s4095_s5 = scalar_lea.hbm %s5220_s3, 4096 }
 0x223   : > { %p4092_p6 = scmp.ne.s32.totalorder %s5163_s21, %s4091_s29  ;;  %p4096_p10 = scmp.lt.u32.totalorder %s5163_s21, %s5220_s3 }
 0x224   : > { %p4097_p11 = scmp.lt.u32.totalorder %s4095_s5, %s4091_s29  ;;  %p4099_p13 = scmp.lt.u32.totalorder %s4091_s29, %s5163_s21 }
 0x225   : > { %p4093_p7 = pnand %p4092_p6, %p4220_p4 }
 0x226   : > { %p4098_p12 = por %p4097_p11, %p4096_p10 }
 0x227   : > { %p4094_p9 = pneg %p4093_p7 }
 0x228   : > { %p4100_p0 = por %p4099_p13, %p4098_p12 }
 0x22a   : > { %p4101_p1 = pnand %p4100_p0, %p4094_p9 }
 0x22c   : > { %4104 = shalt.err (!%p4101_p1)
}
 0x22d   : > { %s4158_s8 = smov 64   ;;  %s4159_s9 = smov 4  }
 0x22e   : > { %3984 = dma.vmem_to_hbm [thread:$0]  (%p4220_p4), %s5165_s11, 2048, %s5163_s21, %s5171_s15, %s4158_s8, %s4158_s8, %s4159_s9  }
 0x22f PF: > { %p3990_p2 = scmp.ge.s32.totalorder %s4155_s17, 2  ;;  %s2827_s10 = sand.u32 1, %s4135_s12  }
 0x230   : > { %s2828_s18 = scalar_lea.sflag [#allocation3], %s2827_s10 }
 0x231   : > { %p3987_p3 = pnand %p3990_p2, %p4227_p8 }
 0x233   : > { %4130 = dma.done.wait (!%p3987_p3), %s2828_s18, 2048  }
 0x234   : > { %4132 = vsyncadd (!%p3987_p3), %s2828_s18, 4294965248  ;;  %s16_s17 = sadd.s32 1, %s4155_s17   ;;  %s5302_s12 = smov %s4139_s13 }
 0x235   : > { %p13_p5 = scmp.ge.s32.totalorder %s16_s17, 4   ;;  %s5303_s13 = smov %s4143_s14 }
 0x236   : > { %s5304_s14 = smov %s4233_s25  ;;  %s5305_s15 = smov %s4151_s16 }
 0x237   : > { %s5306_s16 = smov %s5308_s20  ;;  %15 = sbr.rel (!%p13_p5) target bundleno = 4 (0x4), region = 81 }
 0x23e   :  { %2833 = vsyncpa [#allocation3], 1 }
 0x23f   :  { %2835 = vsyncpa [#allocation3 + $0x1], 1 }

// kernel: tpu_custom_call.1
= control target key start
LH: loop header
LB: loop body
LE: loop exit
PB: predicated region body
PF: predicated region fallthrough
CT: control target
= control target key end

     0   :  { %8 = vsyncpa [#allocation4], 0  ;;  %s1203_s0 = inlined_call_operand.vmem [shape: bf16[512,36], index: 0, kind: input, shape index: {}]   ;;  %s1204_s1 = inlined_call_operand.vmem [shape: bf16[36,128], index: 1, kind: input, shape index: {}]   ;;  %s1205_s2 = inlined_call_operand.vmem [shape: f32[1,128], index: 2, kind: input, shape index: {}]   ;;  %s1206_s3 = inlined_call_operand.hbm [shape: bf16[512,128], index: 3, kind: output, shape index: {}]  }
   0x1   :  { %10 = vsyncpa [#allocation4 + $0x1], 0  ;;  %s1054_s12 = smov 0   ;;  %s1056_s13 = smov 0  }
   0x2   :  { %s1058_s14 = smov 0   ;;  %s1060_s15 = smov 0  }
   0x3   :  { %s1062_s16 = smov 0   ;;  %s1064_s17 = smov 0  }
   0x4 LB: > { %s728_s18 = sadd.s32 4294967295, %s1029_s17   ;;  %s729_s19 = sadd.s32 4294967294, %s1029_s17   ;;  %s1029_s17 = sphi %s1064_s17, %s16_s17   ;;  %s1025_s16 = sphi %s1062_s16, %s1213_s16   ;;  %s1021_s15 = sphi %s1060_s15, %s1212_s15   ;;  %s1017_s14 = sphi %s1058_s14, %s1211_s14   ;;  %s1013_s13 = sphi %s1056_s13, %s1210_s13   ;;  %s1009_s12 = sphi %s1054_s12, %s1209_s12  }
   0x5   : > { %s28_s20 = sadd.s32 1, %s1025_s16  ;;  %s110_s21 = sadd.s32 1, %s1017_s14 }
   0x6   : > { %p30_p0 = scmp.ge.s32.totalorder %s28_s20, 4  ;;  %p120_p1 = scmp.ne.s32.totalorder %s1017_s14, %s1013_s13 }
   0x7   : > { %p121_p2 = scmp.eq.s32.totalorder %s728_s18, 3  ;;  %p126_p3 = scmp.ne.s32.totalorder %s1013_s13, %s1009_s12 }
   0x8   : > { %s1215_s20 = smov (%p30_p0, %s28_s20), 0  ;;  %p127_p5 = scmp.eq.s32.totalorder %s729_s19, 3 }
   0x9   : > { %p1094_p4 = por %p121_p2, %p120_p1  ;;  %s107_s23 = ssub.s32 %s1025_s16, %s1215_s20 }
   0xa   : > { %p733_p6 = scmp.ge.s32.totalorder %s1029_s17, 1  ;;  %p108_p7 = scmp.eq.s32.totalorder %s107_s23, 0 }
   0xb   : > { %p1101_p8 = por %p127_p5, %p126_p3  ;;  %p169_p9 = scmp.lt.s32.totalorder %s1029_s17, 5 }
   0xc   : > { %s1107_s25 = scalar_select %p108_p7, %s1017_s14, %s110_s21  }
   0xd   : > { %p170_p10 = pnand %p733_p6, %p169_p9 }
   0xe   : > { %v940_v0 = vld [vmem:[%s1204_s1] sm:$0xff] (!%p170_p10)   ;;  %v941_v1 = vld [vmem:[%s1204_s1 + $0x8] sm:$0xff] (!%p170_p10)   ;;  %s735_s30 = sshll.u32 (!%p170_p10), %s1021_s15, 4  ;;  %v942_v2 = vld [vmem:[%s1204_s1 + $0x10] ss:$0 sps:$4 sm:$0x33] (!%p170_p10)  }
   0xf   : > { %173 = sbr.rel (%p170_p10) target bundleno = 272 (0x110), region = 32  ;;  %853 = vmatprep.subr.bf16.mxu0 (!%p170_p10), %v940_v0  ;;  %875 = vmatprep.subr.bf16.mxu1 (!%p170_p10), %v940_v0  ;;  %p202_p11 = scmp.lt.s32.totalorder (!%p170_p10), %s735_s30, 63  ;;  %vm355_vm0 = vcmask (!%p170_p10), 1041408   ;;  %vm330_vm1 = vcmask (!%p170_p10), 293888   ;;  %v756_v12 = vld [vmem:[%s1205_s2] ss:$0 sm:$0xff] (!%p170_p10) }
  0x10   : > { %854 = vmatpush3.bf16.msra.mxu0 (!%p170_p10), %v940_v0  ;;  %878 = vmatpush3.bf16.msra.mxu1 (!%p170_p10), %v940_v0  ;;  %v357_v3 = vsel (!%p170_p10), %vm355_vm0, %v942_v2, 0  ;;  %s198_s18 = sand.u32 (!%p170_p10), 1, %s1013_s13   ;;  %s794_s23 = sshll.u32 (!%p170_p10), %s1021_s15, 10 }
  0x11   : > { %855 = vmatprep.subr.bf16.mxu0 (!%p170_p10), %v941_v1  ;;  %876 = vmatprep.subr.bf16.mxu1 (!%p170_p10), %v941_v1  ;;  %s734_s19 = sshll.u32 (!%p170_p10), %s198_s18, 6  ;;  %s1147_s15 = scalar_lea.hbm (!%p170_p10), %s1206_s3, %s794_s23 }
  0x12   : > { %s1136_s21 = scalar_lea.vmem (!%p170_p10), [#allocation3], %s734_s19  ;;  %s1157_s29 = scalar_lea.sflag (!%p170_p10), [#allocation4], %s198_s18 }
  0x13   : > { %s640_s26 = sshll.u32 (!%p170_p10), %s1136_s21, 4  ;;  %s1031_s4 = smov (!%p170_p10), [#allocation3]   ;;  %s1149_s26 = int_to_ptr.vmem [resolvable:$true] %s640_s26 }
  0x14   : > { %856 = vmatpush3.bf16.msra.mxu0 (!%p170_p10), %v941_v1  ;;  %879 = vmatpush3.bf16.msra.mxu1 (!%p170_p10), %v941_v1  ;;  %s955_s5 = sshll.u32 (!%p170_p10), %s1031_s4, 4  ;;  %s956_s5 = int_to_ptr.vmem [resolvable:$false] %s955_s5 }
  0x15   : > { %881 = vmatprep.subr.msk.bf16.mxu0 (!%p170_p10), %vm355_vm0, %v942_v2  ;;  %882 = vmatprep.subr.msk.bf16.mxu1 (!%p170_p10), %vm355_vm0, %v942_v2  ;;  %p958_p1 = scmp.lt.s32.totalorder (!%p170_p10), %s1149_s26, %s956_s5 }
  0x16   : > { %s1217_s30 = smov (!%p202_p11, %s735_s30), 63 }
  0x17   : > { %s736_s6 = sshll.u32 %s1217_s30, 2  ;;  %s951_s30 = scalar_lea.vmem %s1149_s26, 1024 }
  0x18   : > { %s208_s9 = scalar_lea.vmem %s1203_s0, %s736_s6  ;;  %858 = vmatpush3.bf16.msra.mxu0 %v357_v3  ;;  %880 = vmatpush3.bf16.msra.mxu1 %v357_v3  ;;  %p952_p12 = scmp.ne.s32.totalorder %s1149_s26, %s951_s30 }
  0x19   : > { %v943_v4 = vld [vmem:[%s208_s9] sm:$0xff]   ;;  %v945_v6 = vld [vmem:[%s208_s9 + $0x8] sm:$0xff]   ;;  %v947_v8 = vld [vmem:[%s208_s9 + $0x10] sm:$0xff]   ;;  %s957_s6 = scalar_lea.vmem %s956_s5, 2048 }
  0x1a   : > { %v944_v5 = vld [vmem:[%s208_s9 + $0x20] sm:$0xff]   ;;  %859 = vmatprep.mubr.msk.bf16.mxu0 %vm330_vm1, %v943_v4  ;;  %v946_v7 = vld [vmem:[%s208_s9 + $0x28] sm:$0xff]   ;;  %v948_v9 = vld [vmem:[%s208_s9 + $0x30] sm:$0xff]   ;;  %p953_p13 = pnand %p952_p12, %p1094_p4  ;;  %p959_p2 = scmp.lt.s32.totalorder %s957_s6, %s951_s30 }
  0x1b   : > { %867 = vmatprep.mubr.msk.bf16.mxu1 %vm330_vm1, %v944_v5  ;;  %860 = vmatmul.mubr.msk.bf16.vlgmr.msra.gmra.mrb[0].mxu0 %vm330_vm1, %v945_v6  ;;  %v949_v10 = vld [vmem:[%s208_s9 + $0x18] sm:$0xff]  }
  0x1c   : > { %868 = vmatmul.mubr.msk.bf16.vlgmr.msra.gmra.mrb[0].mxu1 %vm330_vm1, %v946_v7  ;;  %863 = vmatprep.mubr.msk.bf16.mxu0 %vm330_vm1, %v947_v8  ;;  %v950_v11 = vld [vmem:[%s208_s9 + $0x38] sm:$0xff]   ;;  %p954_p0 = pneg %p953_p13  ;;  %p960_p3 = por %p959_p2, %p958_p1 }
  0x1d   : > { %871 = vmatprep.mubr.msk.bf16.mxu1 %vm330_vm1, %v948_v9 }
  0x1e   : > { %p961_p5 = pnand %p960_p3, %p954_p0 }
  0x23   : > { %864 = vmatmul.mubr.msk.bf16.gmra.mrb[4].mxu0 %vm330_vm1, %v949_v10 }
  0x24   : > { %872 = vmatmul.mubr.msk.bf16.gmra.mrb[4].mxu1 %vm330_vm1, %v950_v11 }
  0xee   : > { %v861_v13 = vpop.f32.mrb[0].mxu0 }
  0xef   : > { %v869_v14 = vpop.f32.mrb[0].mxu1  ;;  %v516_v15 = vadd.f32 %v861_v13, %v756_v12  ;;  %v393_v17 = vpop.f32.mrb[1].mxu0 }
  0xf0   : > { %v524_v16 = vadd.f32 %v869_v14, %v756_v12  ;;  %v425_v18 = vpop.f32.mrb[1].mxu1  ;;  %v514_v19 = vadd.f32 %v756_v12, %v393_v17  ;;  %v862_v21 = vpop.f32.mrb[2].mxu0 }
  0xf1   : > { %v522_v20 = vadd.f32 %v756_v12, %v425_v18  ;;  %v870_v22 = vpop.f32.mrb[2].mxu1  ;;  %v517_v23 = vadd.f32 %v862_v21, %v756_v12  ;;  %v396_v25 = vpop.f32.mrb[3].mxu0  ;;  %v532_v29 = vmax.f32 %v516_v15, 0.0 }
  0xf2   : > { %v525_v24 = vadd.f32 %v870_v22, %v756_v12  ;;  %v428_v26 = vpop.f32.mrb[3].mxu1  ;;  %v515_v27 = vadd.f32 %v756_v12, %v396_v25  ;;  %v540_v30 = vmax.f32 %v524_v16, 0.0  ;;  %v530_v33 = vmax.f32 %v514_v19, 0.0 }
  0xf3   : > { %v523_v28 = vadd.f32 %v756_v12, %v428_v26  ;;  %v533_v31 = vmax.f32 %v517_v23, 0.0  ;;  %v538_v34 = vmax.f32 %v522_v20, 0.0 }
  0xf4   : > { %v541_v32 = vmax.f32 %v525_v24, 0.0  ;;  %v531_v35 = vmax.f32 %v515_v27, 0.0 }
  0xf5   : > { %v539_v36 = vmax.f32 %v523_v28, 0.0  ;;  %v803_v37 = vpack.c.bf16 %v533_v31, %v532_v29 }
  0xf6   : > { %v823_v38 = vpack.c.bf16 %v541_v32, %v540_v30  ;;  %v798_v39 = vpack.c.bf16 %v531_v35, %v530_v33  ;;  %v865_v41 = vpop.f32.mrb[4].mxu0 }
  0xf7   : > { %v818_v40 = vpack.c.bf16 %v539_v36, %v538_v34  ;;  %v873_v42 = vpop.f32.mrb[4].mxu1  ;;  %835 = vst [vmem:[%s1136_s21 + $0x8] sm:$0xff] %v803_v37   ;;  %v520_v43 = vadd.f32 %v865_v41, %v756_v12  ;;  %v409_v45 = vpop.f32.mrb[5].mxu0 }
  0xf8   : > { %839 = vst [vmem:[%s1136_s21 + $0x28] sm:$0xff] %v823_v38   ;;  %v528_v44 = vadd.f32 %v873_v42, %v756_v12  ;;  %v441_v46 = vpop.f32.mrb[5].mxu1  ;;  %799 = vst [vmem:[%s1136_s21] sm:$0xff] %v798_v39   ;;  %v518_v47 = vadd.f32 %v756_v12, %v409_v45  ;;  %v866_v49 = vpop.f32.mrb[6].mxu0 }
  0xf9   : > { %838 = vst [vmem:[%s1136_s21 + $0x20] sm:$0xff] %v818_v40   ;;  %v526_v48 = vadd.f32 %v756_v12, %v441_v46  ;;  %v874_v50 = vpop.f32.mrb[6].mxu1  ;;  %v521_v51 = vadd.f32 %v866_v49, %v756_v12  ;;  %v412_v53 = vpop.f32.mrb[7].mxu0  ;;  %v536_v57 = vmax.f32 %v520_v43, 0.0 }
  0xfa   : > { %v529_v52 = vadd.f32 %v874_v50, %v756_v12  ;;  %v444_v54 = vpop.f32.mrb[7].mxu1  ;;  %v519_v55 = vadd.f32 %v756_v12, %v412_v53  ;;  %v544_v58 = vmax.f32 %v528_v44, 0.0  ;;  %v534_v61 = vmax.f32 %v518_v47, 0.0 }
  0xfb   : > { %v527_v56 = vadd.f32 %v756_v12, %v444_v54  ;;  %v537_v59 = vmax.f32 %v521_v51, 0.0  ;;  %v542_v62 = vmax.f32 %v526_v48, 0.0 }
  0xfc   : > { %v545_v60 = vmax.f32 %v529_v52, 0.0  ;;  %v535_v63 = vmax.f32 %v519_v55, 0.0 }
  0xfd   : > { %v543_v0 = vmax.f32 %v527_v56, 0.0  ;;  %v813_v1 = vpack.c.bf16 %v537_v59, %v536_v57 }
  0xfe   : > { %v833_v2 = vpack.c.bf16 %v545_v60, %v544_v58  ;;  %v808_v3 = vpack.c.bf16 %v535_v63, %v534_v61 }
  0xff   : > { %v828_v4 = vpack.c.bf16 %v543_v0, %v542_v62  ;;  %837 = vst [vmem:[%s1136_s21 + $0x18] sm:$0xff] %v813_v1  }
 0x100   : > { %841 = vst [vmem:[%s1136_s21 + $0x38] sm:$0xff] %v833_v2   ;;  %836 = vst [vmem:[%s1136_s21 + $0x10] sm:$0xff] %v808_v3  }
 0x101   : > { %840 = vst [vmem:[%s1136_s21 + $0x30] sm:$0xff] %v828_v4  }
 0x102   : > { %964 = shalt.err (!%p961_p5)
}
 0x103   : > { %s965_s7 = scalar_lea.hbm %s1147_s15, 1024  ;;  %s969_s10 = scalar_lea.hbm %s1206_s3, 4096 }
 0x104   : > { %p966_p6 = scmp.ne.s32.totalorder %s1147_s15, %s965_s7  ;;  %p970_p10 = scmp.lt.u32.totalorder %s1147_s15, %s1206_s3 }
 0x105   : > { %p971_p11 = scmp.lt.u32.totalorder %s969_s10, %s965_s7  ;;  %p973_p13 = scmp.lt.u32.totalorder %s965_s7, %s1147_s15 }
 0x106   : > { %p967_p7 = pnand %p966_p6, %p1094_p4 }
 0x107   : > { %p972_p12 = por %p971_p11, %p970_p10 }
 0x108   : > { %p968_p9 = pneg %p967_p7 }
 0x109   : > { %p974_p0 = por %p973_p13, %p972_p12 }
 0x10b   : > { %p975_p1 = pnand %p974_p0, %p968_p9 }
 0x10d   : > { %978 = shalt.err (!%p975_p1)
}
 0x10e   : > { %s1032_s19 = smov 64   ;;  %s1033_s21 = smov 4  }
 0x10f   : > { %883 = dma.vmem_to_hbm [thread:$0]  (%p1094_p4), %s1149_s26, 1024, %s1147_s15, %s1157_s29, %s1032_s19, %s1032_s19, %s1033_s21  }
 0x110 PF: > { %p889_p2 = scmp.ge.s32.totalorder %s1029_s17, 2  ;;  %s655_s23 = sand.u32 1, %s1009_s12  }
 0x111   : > { %s656_s27 = scalar_lea.sflag [#allocation4], %s655_s23 }
 0x112   : > { %p886_p3 = pnand %p889_p2, %p1101_p8 }
 0x114   : > { %1004 = dma.done.wait (!%p886_p3), %s656_s27, 1024  }
 0x115   : > { %1006 = vsyncadd (!%p886_p3), %s656_s27, 4294966272  ;;  %s16_s17 = sadd.s32 1, %s1029_s17   ;;  %s1209_s12 = smov %s1013_s13 }
 0x116   : > { %p13_p5 = scmp.ge.s32.totalorder %s16_s17, 6   ;;  %s1210_s13 = smov %s1017_s14 }
 0x117   : > { %s1211_s14 = smov %s1107_s25  ;;  %s1212_s15 = smov %s1025_s16 }
 0x118   : > { %s1213_s16 = smov %s1215_s20  ;;  %15 = sbr.rel (!%p13_p5) target bundleno = 4 (0x4), region = 78 }
 0x11f   :  { %661 = vsyncpa [#allocation4], 1 }
 0x120   :  { %663 = vsyncpa [#allocation4 + $0x1], 1 }

</bundles_post_ra>
